<compile_context>
chip_gen: v5e
topology: v5e:2x2
jax: 0.10.0
libtpu: 0.0.40
codegen_flags: <defaults>
</compile_context>

<pallas_src>
import math
from functools import partial

import jax
import jax.numpy as jnp
from jax.experimental import pallas as pl
from jax.experimental.pallas import tpu as pltpu

_ROW_TILE = 256                      # rows per grid step (multiple of 8)
_VMEM_LIMIT = 32 * 1024 * 1024       # explicit scoped-VMEM budget (safe on v5e/v6e/v7x)


def _compiler_params(grid_rank):
    return pltpu.CompilerParams(
        dimension_semantics=("parallel",) * grid_rank,
        vmem_limit_bytes=_VMEM_LIMIT,
    )


def _row_tile(m):
    return m if m <= _ROW_TILE else _ROW_TILE


# ----------------------------------------------------------------------------- kernels
def _layernorm_kernel(x_ref, a_ref, b_ref, o_ref, *, eps):
    x = x_ref[...].astype(jnp.float32)                              # (tm, D)
    mean = jnp.mean(x, axis=-1, keepdims=True)
    c = x - mean
    # torch.Tensor.std -> unbiased estimator (divide by D - 1), eps added to std
    std = jnp.sqrt(jnp.sum(c * c, axis=-1, keepdims=True) / (x.shape[-1] - 1))
    o_ref[...] = (a_ref[...] * c / (std + eps) + b_ref[...]).astype(o_ref.dtype)


def _linear_kernel(x_ref, w_ref, b_ref, o_ref, *, activation):
    y = jnp.dot(x_ref[...], w_ref[...], preferred_element_type=jnp.float32)
    y = y + b_ref[...]
    if activation == "relu":
        y = jnp.maximum(y, 0.0)
    o_ref[...] = y.astype(o_ref.dtype)


def _residual_linear_kernel(x_ref, res_ref, w_ref, b_ref, o_ref):
    y = jnp.dot(x_ref[...], w_ref[...], preferred_element_type=jnp.float32)
    o_ref[...] = (res_ref[...] + y + b_ref[...]).astype(o_ref.dtype)


def _gated_output_kernel(g_ref, y_ref, res_ref, w_ref, o_ref):
    z = g_ref[...] * y_ref[...]
    z = z * (1.0 / (1.0 + jnp.exp(-z)))                             # swish(z) = z*sigmoid(z)
    out = jnp.dot(z, w_ref[...], preferred_element_type=jnp.float32)
    o_ref[...] = (res_ref[...] + out).astype(o_ref.dtype)


def _retention_kernel(q_ref, kp_ref, vpt_ref, dt_ref, o_ref):
    q = q_ref[0, 0]                                                 # (S, d_k)
    kp = kp_ref[0, 0]                                               # (d_k, d_k)
    vpt = vpt_ref[0, 0]                                             # (d_k, d_k)
    dt = dt_ref[0]                                                  # (S, d_k)
    s = jnp.dot(q, kp, preferred_element_type=jnp.float32) * dt
    s = s - jnp.max(s, axis=-1, keepdims=True)                      # stable softmax over d_k
    e = jnp.exp(s)
    p = e / jnp.sum(e, axis=-1, keepdims=True)
    o = jnp.dot(p, vpt, preferred_element_type=jnp.float32)
    o_ref[...] = o[None, None].astype(o_ref.dtype)


def _groupnorm_kernel(x_ref, gm_ref, gmt_ref, w_ref, b_ref, o_ref, *, group_size, eps):
    # GroupNorm over rows of (tm, C): group stats via one-hot group-map matmuls
    # (avoids lane-dim reshapes inside the kernel).
    x = x_ref[...].astype(jnp.float32)                              # (tm, C)
    gm = gm_ref[...]                                                # (C, G)
    gmt = gmt_ref[...]                                              # (G, C)
    mean_g = jnp.dot(x, gm, preferred_element_type=jnp.float32) / group_size
    msq_g = jnp.dot(x * x, gm, preferred_element_type=jnp.float32) / group_size
    var_g = msq_g - mean_g * mean_g
    mean = jnp.dot(mean_g, gmt, preferred_element_type=jnp.float32)
    var = jnp.dot(var_g, gmt, preferred_element_type=jnp.float32)
    y = (x - mean) * jax.lax.rsqrt(var + eps)
    o_ref[...] = (y * w_ref[...] + b_ref[...]).astype(o_ref.dtype)


# ----------------------------------------------------------------------------- wrappers
def layernorm(x, alpha, bias, *, eps=1e-6):
    M, D = x.shape
    tm = _row_tile(M)
    return pl.pallas_call(
        partial(_layernorm_kernel, eps=eps),
        out_shape=jax.ShapeDtypeStruct((M, D), x.dtype),
        grid=(pl.cdiv(M, tm),),
        in_specs=[
            pl.BlockSpec((tm, D), lambda i: (i, 0)),
            pl.BlockSpec((1, D), lambda i: (0, 0)),
            pl.BlockSpec((1, D), lambda i: (0, 0)),
        ],
        out_specs=pl.BlockSpec((tm, D), lambda i: (i, 0)),
        compiler_params=_compiler_params(1),
    )(x, alpha.reshape(1, D), bias.reshape(1, D))


def linear(x, w, b=None, *, activation=None):
    M, K = x.shape
    N = w.shape[1]
    if b is None:
        b = jnp.zeros((N,), x.dtype)                                # bias=False layers
    tm = _row_tile(M)
    return pl.pallas_call(
        partial(_linear_kernel, activation=activation),
        out_shape=jax.ShapeDtypeStruct((M, N), x.dtype),
        grid=(pl.cdiv(M, tm),),
        in_specs=[
            pl.BlockSpec((tm, K), lambda i: (i, 0)),
            pl.BlockSpec((K, N), lambda i: (0, 0)),
            pl.BlockSpec((1, N), lambda i: (0, 0)),
        ],
        out_specs=pl.BlockSpec((tm, N), lambda i: (i, 0)),
        compiler_params=_compiler_params(1),
    )(x, w, b.reshape(1, N))


def residual_linear(x, res, w, b):
    M, K = x.shape
    N = w.shape[1]
    tm = _row_tile(M)
    return pl.pallas_call(
        _residual_linear_kernel,
        out_shape=jax.ShapeDtypeStruct((M, N), res.dtype),
        grid=(pl.cdiv(M, tm),),
        in_specs=[
            pl.BlockSpec((tm, K), lambda i: (i, 0)),
            pl.BlockSpec((tm, N), lambda i: (i, 0)),
            pl.BlockSpec((K, N), lambda i: (0, 0)),
            pl.BlockSpec((1, N), lambda i: (0, 0)),
        ],
        out_specs=pl.BlockSpec((tm, N), lambda i: (i, 0)),
        input_output_aliases={1: 0},                 # residual buffer reused for output
        compiler_params=_compiler_params(1),
    )(x, res, w, b.reshape(1, N))


def gated_output(g, y, res, w):
    M, D = g.shape
    tm = _row_tile(M)
    return pl.pallas_call(
        _gated_output_kernel,
        out_shape=jax.ShapeDtypeStruct((M, D), res.dtype),
        grid=(pl.cdiv(M, tm),),
        in_specs=[
            pl.BlockSpec((tm, D), lambda i: (i, 0)),
            pl.BlockSpec((tm, D), lambda i: (i, 0)),
            pl.BlockSpec((tm, D), lambda i: (i, 0)),
            pl.BlockSpec((D, D), lambda i: (0, 0)),
        ],
        out_specs=pl.BlockSpec((tm, D), lambda i: (i, 0)),
        input_output_aliases={2: 0},                 # residual buffer reused for output
        compiler_params=_compiler_params(1),
    )(g, y, res, w)


def retention(q4, kp, vpt, dt):
    B, H, S, dk = q4.shape
    return pl.pallas_call(
        _retention_kernel,
        out_shape=jax.ShapeDtypeStruct((B, H, S, dk), q4.dtype),
        grid=(B, H),
        in_specs=[
            pl.BlockSpec((1, 1, S, dk), lambda b, h: (b, h, 0, 0)),
            pl.BlockSpec((1, 1, dk, dk), lambda b, h: (b, h, 0, 0)),
            pl.BlockSpec((1, 1, dk, dk), lambda b, h: (b, h, 0, 0)),
            pl.BlockSpec((1, S, dk), lambda b, h: (h, 0, 0)),
        ],
        out_specs=pl.BlockSpec((1, 1, S, dk), lambda b, h: (b, h, 0, 0)),
        compiler_params=_compiler_params(2),
    )(q4, kp, vpt, dt)


def group_norm(x, weight, bias, *, num_groups, eps=1e-5):
    M, C = x.shape
    G = num_groups
    gs = C // G
    gm = (jnp.arange(C)[:, None] // gs == jnp.arange(G)[None, :]).astype(x.dtype)  # (C, G)
    tm = _row_tile(M)
    return pl.pallas_call(
        partial(_groupnorm_kernel, group_size=float(gs), eps=eps),
        out_shape=jax.ShapeDtypeStruct((M, C), x.dtype),
        grid=(pl.cdiv(M, tm),),
        in_specs=[
            pl.BlockSpec((tm, C), lambda i: (i, 0)),
            pl.BlockSpec((C, G), lambda i: (0, 0)),
            pl.BlockSpec((G, C), lambda i: (0, 0)),
            pl.BlockSpec((1, C), lambda i: (0, 0)),
            pl.BlockSpec((1, C), lambda i: (0, 0)),
        ],
        out_specs=pl.BlockSpec((tm, C), lambda i: (i, 0)),
        compiler_params=_compiler_params(1),
    )(x, gm, gm.T, weight.reshape(1, C), bias.reshape(1, C))


# ----------------------------------------------------------------------------- forward
@partial(jax.jit, static_argnames=("head_num",))
def encoder_block_forward(x, params, *, head_num):
    """Eval-mode forward of the PyTorch EncoderBlock (dropout = identity)."""
    B, S, D = x.shape
    H = head_num
    dk = D // H
    M = B * S
    x2 = x.reshape(M, D)                                            # lane-dense token slab

    # ---- residual sublayer 0: retention-style multi-head attention -------------
    h = layernorm(x2, params["ln0_alpha"], params["ln0_bias"], eps=1e-6)
    q = linear(h, params["w_q"])                                    # bias=False
    k = linear(h, params["w_k"])
    v = linear(h, params["w_v"])
    # TODO(synk): self.xpos(query/key) skipped — XPOS class not defined in the spec.
    q4 = q.reshape(B, S, H, dk).transpose(0, 2, 1, 3)               # (B, H, S, dk)
    kT = k.reshape(B, S, H, dk).transpose(0, 2, 3, 1)               # (B, H, dk, S)
    vT = v.reshape(B, S, H, dk).transpose(0, 2, 3, 1)               # (B, H, dk, S)
    # get_EF("learnable") compression: Linear(S -> dk) along the sequence axis.
    kp = linear(kT.reshape(B * H * dk, S), params["wx_w"], params["wx_b"]).reshape(B, H, dk, dk)
    vp = linear(vT.reshape(B * H * dk, S), params["wx_w"], params["wx_b"]).reshape(B, H, dk, dk)
    y4 = retention(q4, kp, jnp.swapaxes(vp, -1, -2), params["Dt"])  # (B, H, S, dk)
    y = y4.transpose(0, 2, 1, 3).reshape(M * H, dk)                 # rows ordered (b, s, h)
    y = group_norm(y, params["gn_weight"], params["gn_bias"], num_groups=H, eps=1e-5)
    y = y.reshape(M, D)
    g = linear(h, params["w_g"])                                    # gate on the normed input
    x2 = gated_output(g, y, x2, params["w_o"])                      # x + w_o(swish(w_g(h) * y))

    # ---- residual sublayer 1: position-wise feed-forward ------------------------
    h2 = layernorm(x2, params["ln1_alpha"], params["ln1_bias"], eps=1e-6)
    f = linear(h2, params["l1_w"], params["l1_b"], activation="relu")
    x2 = residual_linear(f, x2, params["l2_w"], params["l2_b"])     # x + L2(relu(L1(h2)))
    return x2.reshape(B, S, D)


# ----------------------------------------------------------------------------- params
def build_decay_transposed(seq_len, d_k, head_num, dtype=jnp.float32):
    # gammas = 1 - exp(linspace(log(1/32), log(1/512), H)); D[h] = gamma^(n-m) * (n >= m)
    gammas = 1.0 - jnp.exp(jnp.linspace(math.log(1.0 / 32.0), math.log(1.0 / 512.0), head_num))
    n = jnp.arange(d_k, dtype=jnp.float32)[:, None]                 # (d_k, 1)
    m = jnp.arange(seq_len, dtype=jnp.float32)[None, :]             # (1, S)
    mask = (n >= m)
    powed = gammas[:, None, None].astype(jnp.float32) ** (n - m)[None]   # (H, d_k, S)
    D = jnp.where(mask[None], powed, 0.0)                           # masked -> no NaN cleanup needed
    return jnp.swapaxes(D, -1, -2).astype(dtype)                    # (H, S, d_k) == D^T per head


def init_params(key, *, d_model, d_ff, head_num, seq_len):
    d_k = d_model // head_num
    ks = jax.random.split(key, 8)

    def dense(k, fan_in, fan_out):                                  # weights stored as (in, out)
        bound = 1.0 / math.sqrt(fan_in)
        return jax.random.uniform(k, (fan_in, fan_out), jnp.float32, -bound, bound)

    return {
        "ln0_alpha": jnp.ones((d_model,), jnp.float32),
        "ln0_bias": jnp.zeros((d_model,), jnp.float32),
        "ln1_alpha": jnp.ones((d_model,), jnp.float32),
        "ln1_bias": jnp.zeros((d_model,), jnp.float32),
        "w_q": dense(ks[0], d_model, d_model),
        "w_k": dense(ks[1], d_model, d_model),
        "w_v": dense(ks[2], d_model, d_model),
        "w_g": dense(ks[3], d_model, d_model),
        "w_o": dense(ks[4], d_model, d_model),
        # get_EF re-initializes a fresh random Linear(S, d_k) per forward in torch;
        # here it is a fixed, deterministic parameter.
        "wx_w": dense(ks[5], seq_len, d_k),
        "wx_b": jnp.zeros((d_k,), jnp.float32),
        "gn_weight": jnp.ones((d_k,), jnp.float32),
        "gn_bias": jnp.zeros((d_k,), jnp.float32),
        "l1_w": dense(ks[6], d_model, d_ff),
        "l1_b": jnp.zeros((d_ff,), jnp.float32),
        "l2_w": dense(ks[7], d_ff, d_model),
        "l2_b": jnp.zeros((d_model,), jnp.float32),
        "Dt": build_decay_transposed(seq_len, d_k, head_num),
    }


# ----------------------------------------------------------------------------- reference
def reference_forward(x, params, *, head_num):
    """Pure-jnp replica of the eval-mode EncoderBlock forward (for verification)."""
    B, S, D = x.shape
    H = head_num
    dk = D // H

    def ln(z, a, b, eps=1e-6):
        mu = jnp.mean(z, axis=-1, keepdims=True)
        c = z - mu
        std = jnp.sqrt(jnp.sum(c * c, axis=-1, keepdims=True) / (z.shape[-1] - 1))
        return a * c / (std + eps) + b

    h = ln(x, params["ln0_alpha"], params["ln0_bias"])
    q = h @ params["w_q"]
    k = h @ params["w_k"]
    v = h @ params["w_v"]
    q4 = q.reshape(B, S, H, dk).transpose(0, 2, 1, 3)
    kT = k.reshape(B, S, H, dk).transpose(0, 2, 3, 1)
    vT = v.reshape(B, S, H, dk).transpose(0, 2, 3, 1)
    kp = kT @ params["wx_w"] + params["wx_b"]
    vp = vT @ params["wx_w"] + params["wx_b"]
    s = (q4 @ kp) * params["Dt"][None]
    p = jax.nn.softmax(s, axis=-1)
    y = p @ jnp.swapaxes(vp, -1, -2)
    y = y.transpose(0, 2, 1, 3).reshape(B * S * H, dk)
    gs = dk // H
    yg = y.reshape(-1, H, gs)
    mu = jnp.mean(yg, axis=-1, keepdims=True)
    var = jnp.mean((yg - mu) ** 2, axis=-1, keepdims=True)
    y = ((yg - mu) / jnp.sqrt(var + 1e-5)).reshape(-1, dk) * params["gn_weight"] + params["gn_bias"]
    y = y.reshape(B, S, D)
    g = h @ params["w_g"]
    z = g * y
    z = z * jax.nn.sigmoid(z)
    x = x + z @ params["w_o"]
    h2 = ln(x, params["ln1_alpha"], params["ln1_bias"])
    f = jnp.maximum(h2 @ params["l1_w"] + params["l1_b"], 0.0)
    return x + f @ params["l2_w"] + params["l2_b"]


if __name__ == "__main__":
    B, S, D_MODEL, HEADS, D_FF = 2, 8, 32, 4, 64                    # small demo shapes

    root = jax.random.PRNGKey(0)
    kx, kprm = jax.random.split(root)
    x = jax.random.normal(kx, (B, S, D_MODEL), dtype=jnp.float32)
    params = init_params(kprm, d_model=D_MODEL, d_ff=D_FF, head_num=HEADS, seq_len=S)

    y = encoder_block_forward(x, params, head_num=HEADS)
    y = jax.block_until_ready(y)

    assert y.shape == (B, S, D_MODEL)
    assert bool(jnp.all(jnp.isfinite(y))), "non-finite values in kernel output"

    with jax.default_matmul_precision("highest"):
        ref = reference_forward(x, params, head_num=HEADS)
    assert jnp.allclose(y, ref, atol=2e-2, rtol=2e-2), (
        f"mismatch vs pure-JAX reference: max |diff| = {float(jnp.max(jnp.abs(y - ref)))}")

    print("KERNEL_OK")
</pallas_src>

<mosaic_0001>
module attributes {stable_mosaic.version = 11 : i64} {
  func.func @_linear_kernel(%arg0: i32, %arg1: memref<16x32xf32, #tpu.memory_space<vmem>>, %arg2: memref<32x32xf32, #tpu.memory_space<vmem>>, %arg3: memref<1x32xf32, #tpu.memory_space<vmem>>, %arg4: memref<16x32xf32, #tpu.memory_space<vmem>>) attributes {dimension_semantics = [#tpu.dimension_semantics<parallel>], iteration_bounds = array<i64: 1>, scalar_prefetch = 0 : i64, scratch_operands = 0 : i64, tpu.core_type = #tpu.core_type<tc>, window_params = [{transform_indices = @transform_0, window_bounds = array<i64: 16, 32>}, {pipeline_mode = #tpu.pipeline_mode<synchronous>, transform_indices = @transform_1, window_bounds = array<i64: 32, 32>}, {pipeline_mode = #tpu.pipeline_mode<synchronous>, transform_indices = @transform_2, window_bounds = array<i64: 1, 32>}, {transform_indices = @transform_3, window_bounds = array<i64: 16, 32>}]} {
    %c0 = arith.constant 0 : index
    %c0_0 = arith.constant 0 : index
    %0 = vector.load %arg1[%c0, %c0_0] : memref<16x32xf32, #tpu.memory_space<vmem>>, vector<16x32xf32>
    %c0_1 = arith.constant 0 : index
    %c0_2 = arith.constant 0 : index
    %1 = vector.load %arg2[%c0_1, %c0_2] : memref<32x32xf32, #tpu.memory_space<vmem>>, vector<32x32xf32>
    %cst = arith.constant dense<0.000000e+00> : vector<16x32xf32>
    %2 = tpu.matmul %0, %1, %cst {dimension_numbers = #tpu.dot_dimension_numbers<[1], [0], [0], [1], [0, 0, 1, 1], [], []>} : vector<16x32xf32>, vector<32x32xf32>, vector<16x32xf32> -> vector<16x32xf32>
    %c0_3 = arith.constant 0 : index
    %c0_4 = arith.constant 0 : index
    %3 = vector.load %arg3[%c0_3, %c0_4] : memref<1x32xf32, #tpu.memory_space<vmem>>, vector<1x32xf32>
    %4 = vector.broadcast %3 : vector<1x32xf32> to vector<16x32xf32>
    %5 = arith.addf %2, %4 : vector<16x32xf32>
    %c0_5 = arith.constant 0 : index
    %c0_6 = arith.constant 0 : index
    %6 = vector.load %arg4[%c0_5, %c0_6] : memref<16x32xf32, #tpu.memory_space<vmem>>, vector<16x32xf32>
    tpu.vector_store %arg4[%c0_5, %c0_6], %5 {strides = array<i32>} : memref<16x32xf32, #tpu.memory_space<vmem>>, vector<16x32xf32>,
    return
  }
  func.func @transform_0(%arg0: i32) -> (i32, i32) {
    %c0_i32 = arith.constant 0 : i32
    %c0_i32_0 = arith.constant 0 : i32
    return %arg0, %c0_i32 : i32, i32
  }
  func.func @transform_1(%arg0: i32) -> (i32, i32) {
    %c0_i32 = arith.constant 0 : i32
    %c0_i32_0 = arith.constant 0 : i32
    %c0_i32_1 = arith.constant 0 : i32
    return %c0_i32, %c0_i32_0 : i32, i32
  }
  func.func @transform_2(%arg0: i32) -> (i32, i32) {
    %c0_i32 = arith.constant 0 : i32
    %c0_i32_0 = arith.constant 0 : i32
    %c0_i32_1 = arith.constant 0 : i32
    return %c0_i32, %c0_i32_0 : i32, i32
  }
  func.func @transform_3(%arg0: i32) -> (i32, i32) {
    %c0_i32 = arith.constant 0 : i32
    %c0_i32_0 = arith.constant 0 : i32
    return %arg0, %c0_i32 : i32, i32
  }
}

module attributes {stable_mosaic.version = 11 : i64} {
  func.func @_layernorm_kernel(%arg0: i32, %arg1: memref<16x32xf32, #tpu.memory_space<vmem>>, %arg2: memref<1x32xf32, #tpu.memory_space<vmem>>, %arg3: memref<1x32xf32, #tpu.memory_space<vmem>>, %arg4: memref<16x32xf32, #tpu.memory_space<vmem>>) attributes {dimension_semantics = [#tpu.dimension_semantics<parallel>], iteration_bounds = array<i64: 1>, scalar_prefetch = 0 : i64, scratch_operands = 0 : i64, tpu.core_type = #tpu.core_type<tc>, window_params = [{transform_indices = @transform_0, window_bounds = array<i64: 16, 32>}, {pipeline_mode = #tpu.pipeline_mode<synchronous>, transform_indices = @transform_1, window_bounds = array<i64: 1, 32>}, {pipeline_mode = #tpu.pipeline_mode<synchronous>, transform_indices = @transform_2, window_bounds = array<i64: 1, 32>}, {transform_indices = @transform_3, window_bounds = array<i64: 16, 32>}]} {
    %c0 = arith.constant 0 : index
    %c0_0 = arith.constant 0 : index
    %0 = vector.load %arg1[%c0, %c0_0] : memref<16x32xf32, #tpu.memory_space<vmem>>, vector<16x32xf32>
    %cst = arith.constant dense<0.000000e+00> : vector<16xf32>
    %1 = vector.multi_reduction <add>, %0, %cst [1] : vector<16x32xf32> to vector<16xf32>
    %2 = vector.shape_cast %1 : vector<16xf32> to vector<16x1xf32>
    %cst_1 = arith.constant 3.200000e+01 : f32
    %3 = vector.broadcast %cst_1 : f32 to vector<16x1xf32>
    %4 = arith.divf %2, %3 : vector<16x1xf32>
    %5 = vector.broadcast %4 : vector<16x1xf32> to vector<16x32xf32>
    %6 = arith.subf %0, %5 : vector<16x32xf32>
    %7 = arith.mulf %6, %6 : vector<16x32xf32>
    %cst_2 = arith.constant dense<0.000000e+00> : vector<16xf32>
    %8 = vector.multi_reduction <add>, %7, %cst_2 [1] : vector<16x32xf32> to vector<16xf32>
    %9 = vector.shape_cast %8 : vector<16xf32> to vector<16x1xf32>
    %cst_3 = arith.constant 3.100000e+01 : f32
    %10 = vector.broadcast %cst_3 : f32 to vector<16x1xf32>
    %11 = arith.divf %9, %10 : vector<16x1xf32>
    %12 = math.sqrt %11 : vector<16x1xf32>
    %c0_4 = arith.constant 0 : index
    %c0_5 = arith.constant 0 : index
    %13 = vector.load %arg2[%c0_4, %c0_5] : memref<1x32xf32, #tpu.memory_space<vmem>>, vector<1x32xf32>
    %14 = vector.broadcast %13 : vector<1x32xf32> to vector<16x32xf32>
    %15 = arith.mulf %14, %6 : vector<16x32xf32>
    %cst_6 = arith.constant 9.99999997E-7 : f32
    %16 = vector.broadcast %cst_6 : f32 to vector<16x1xf32>
    %17 = arith.addf %12, %16 : vector<16x1xf32>
    %18 = vector.broadcast %17 : vector<16x1xf32> to vector<16x32xf32>
    %19 = arith.divf %15, %18 : vector<16x32xf32>
    %c0_7 = arith.constant 0 : index
    %c0_8 = arith.constant 0 : index
    %20 = vector.load %arg3[%c0_7, %c0_8] : memref<1x32xf32, #tpu.memory_space<vmem>>, vector<1x32xf32>
    %21 = vector.broadcast %20 : vector<1x32xf32> to vector<16x32xf32>
    %22 = arith.addf %19, %21 : vector<16x32xf32>
    %c0_9 = arith.constant 0 : index
    %c0_10 = arith.constant 0 : index
    %23 = vector.load %arg4[%c0_9, %c0_10] : memref<16x32xf32, #tpu.memory_space<vmem>>, vector<16x32xf32>
    tpu.vector_store %arg4[%c0_9, %c0_10], %22 {strides = array<i32>} : memref<16x32xf32, #tpu.memory_space<vmem>>, vector<16x32xf32>,
    return
  }
  func.func @transform_0(%arg0: i32) -> (i32, i32) {
    %c0_i32 = arith.constant 0 : i32
    %c0_i32_0 = arith.constant 0 : i32
    return %arg0, %c0_i32 : i32, i32
  }
  func.func @transform_1(%arg0: i32) -> (i32, i32) {
    %c0_i32 = arith.constant 0 : i32
    %c0_i32_0 = arith.constant 0 : i32
    %c0_i32_1 = arith.constant 0 : i32
    return %c0_i32, %c0_i32_0 : i32, i32
  }
  func.func @transform_2(%arg0: i32) -> (i32, i32) {
    %c0_i32 = arith.constant 0 : i32
    %c0_i32_0 = arith.constant 0 : i32
    %c0_i32_1 = arith.constant 0 : i32
    return %c0_i32, %c0_i32_0 : i32, i32
  }
  func.func @transform_3(%arg0: i32) -> (i32, i32) {
    %c0_i32 = arith.constant 0 : i32
    %c0_i32_0 = arith.constant 0 : i32
    return %arg0, %c0_i32 : i32, i32
  }
}

module attributes {stable_mosaic.version = 11 : i64} {
  func.func @_linear_kernel(%arg0: i32, %arg1: memref<16x32xf32, #tpu.memory_space<vmem>>, %arg2: memref<32x32xf32, #tpu.memory_space<vmem>>, %arg3: memref<1x32xf32, #tpu.memory_space<vmem>>, %arg4: memref<16x32xf32, #tpu.memory_space<vmem>>) attributes {dimension_semantics = [#tpu.dimension_semantics<parallel>], iteration_bounds = array<i64: 1>, scalar_prefetch = 0 : i64, scratch_operands = 0 : i64, tpu.core_type = #tpu.core_type<tc>, window_params = [{transform_indices = @transform_0, window_bounds = array<i64: 16, 32>}, {pipeline_mode = #tpu.pipeline_mode<synchronous>, transform_indices = @transform_1, window_bounds = array<i64: 32, 32>}, {pipeline_mode = #tpu.pipeline_mode<synchronous>, transform_indices = @transform_2, window_bounds = array<i64: 1, 32>}, {transform_indices = @transform_3, window_bounds = array<i64: 16, 32>}]} {
    %c0 = arith.constant 0 : index
    %c0_0 = arith.constant 0 : index
    %0 = vector.load %arg1[%c0, %c0_0] : memref<16x32xf32, #tpu.memory_space<vmem>>, vector<16x32xf32>
    %c0_1 = arith.constant 0 : index
    %c0_2 = arith.constant 0 : index
    %1 = vector.load %arg2[%c0_1, %c0_2] : memref<32x32xf32, #tpu.memory_space<vmem>>, vector<32x32xf32>
    %cst = arith.constant dense<0.000000e+00> : vector<16x32xf32>
    %2 = tpu.matmul %0, %1, %cst {dimension_numbers = #tpu.dot_dimension_numbers<[1], [0], [0], [1], [0, 0, 1, 1], [], []>} : vector<16x32xf32>, vector<32x32xf32>, vector<16x32xf32> -> vector<16x32xf32>
    %c0_3 = arith.constant 0 : index
    %c0_4 = arith.constant 0 : index
    %3 = vector.load %arg3[%c0_3, %c0_4] : memref<1x32xf32, #tpu.memory_space<vmem>>, vector<1x32xf32>
    %4 = vector.broadcast %3 : vector<1x32xf32> to vector<16x32xf32>
    %5 = arith.addf %2, %4 : vector<16x32xf32>
    %c0_5 = arith.constant 0 : index
    %c0_6 = arith.constant 0 : index
    %6 = vector.load %arg4[%c0_5, %c0_6] : memref<16x32xf32, #tpu.memory_space<vmem>>, vector<16x32xf32>
    tpu.vector_store %arg4[%c0_5, %c0_6], %5 {strides = array<i32>} : memref<16x32xf32, #tpu.memory_space<vmem>>, vector<16x32xf32>,
    return
  }
  func.func @transform_0(%arg0: i32) -> (i32, i32) {
    %c0_i32 = arith.constant 0 : i32
    %c0_i32_0 = arith.constant 0 : i32
    return %arg0, %c0_i32 : i32, i32
  }
  func.func @transform_1(%arg0: i32) -> (i32, i32) {
    %c0_i32 = arith.constant 0 : i32
    %c0_i32_0 = arith.constant 0 : i32
    %c0_i32_1 = arith.constant 0 : i32
    return %c0_i32, %c0_i32_0 : i32, i32
  }
  func.func @transform_2(%arg0: i32) -> (i32, i32) {
    %c0_i32 = arith.constant 0 : i32
    %c0_i32_0 = arith.constant 0 : i32
    %c0_i32_1 = arith.constant 0 : i32
    return %c0_i32, %c0_i32_0 : i32, i32
  }
  func.func @transform_3(%arg0: i32) -> (i32, i32) {
    %c0_i32 = arith.constant 0 : i32
    %c0_i32_0 = arith.constant 0 : i32
    return %arg0, %c0_i32 : i32, i32
  }
}

module attributes {stable_mosaic.version = 11 : i64} {
  func.func @_linear_kernel(%arg0: i32, %arg1: memref<64x8xf32, #tpu.memory_space<vmem>>, %arg2: memref<8x8xf32, #tpu.memory_space<vmem>>, %arg3: memref<1x8xf32, #tpu.memory_space<vmem>>, %arg4: memref<64x8xf32, #tpu.memory_space<vmem>>) attributes {dimension_semantics = [#tpu.dimension_semantics<parallel>], iteration_bounds = array<i64: 1>, scalar_prefetch = 0 : i64, scratch_operands = 0 : i64, tpu.core_type = #tpu.core_type<tc>, window_params = [{transform_indices = @transform_0, window_bounds = array<i64: 64, 8>}, {pipeline_mode = #tpu.pipeline_mode<synchronous>, transform_indices = @transform_1, window_bounds = array<i64: 8, 8>}, {pipeline_mode = #tpu.pipeline_mode<synchronous>, transform_indices = @transform_2, window_bounds = array<i64: 1, 8>}, {transform_indices = @transform_3, window_bounds = array<i64: 64, 8>}]} {
    %c0 = arith.constant 0 : index
    %c0_0 = arith.constant 0 : index
    %0 = vector.load %arg1[%c0, %c0_0] : memref<64x8xf32, #tpu.memory_space<vmem>>, vector<64x8xf32>
    %c0_1 = arith.constant 0 : index
    %c0_2 = arith.constant 0 : index
    %1 = vector.load %arg2[%c0_1, %c0_2] : memref<8x8xf32, #tpu.memory_space<vmem>>, vector<8x8xf32>
    %cst = arith.constant dense<0.000000e+00> : vector<64x8xf32>
    %2 = tpu.matmul %0, %1, %cst {dimension_numbers = #tpu.dot_dimension_numbers<[1], [0], [0], [1], [0, 0, 1, 1], [], []>} : vector<64x8xf32>, vector<8x8xf32>, vector<64x8xf32> -> vector<64x8xf32>
    %c0_3 = arith.constant 0 : index
    %c0_4 = arith.constant 0 : index
    %3 = vector.load %arg3[%c0_3, %c0_4] : memref<1x8xf32, #tpu.memory_space<vmem>>, vector<1x8xf32>
    %4 = vector.broadcast %3 : vector<1x8xf32> to vector<64x8xf32>
    %5 = arith.addf %2, %4 : vector<64x8xf32>
    %c0_5 = arith.constant 0 : index
    %c0_6 = arith.constant 0 : index
    %6 = vector.load %arg4[%c0_5, %c0_6] : memref<64x8xf32, #tpu.memory_space<vmem>>, vector<64x8xf32>
    tpu.vector_store %arg4[%c0_5, %c0_6], %5 {strides = array<i32>} : memref<64x8xf32, #tpu.memory_space<vmem>>, vector<64x8xf32>,
    return
  }
  func.func @transform_0(%arg0: i32) -> (i32, i32) {
    %c0_i32 = arith.constant 0 : i32
    %c0_i32_0 = arith.constant 0 : i32
    return %arg0, %c0_i32 : i32, i32
  }
  func.func @transform_1(%arg0: i32) -> (i32, i32) {
    %c0_i32 = arith.constant 0 : i32
    %c0_i32_0 = arith.constant 0 : i32
    %c0_i32_1 = arith.constant 0 : i32
    return %c0_i32, %c0_i32_0 : i32, i32
  }
  func.func @transform_2(%arg0: i32) -> (i32, i32) {
    %c0_i32 = arith.constant 0 : i32
    %c0_i32_0 = arith.constant 0 : i32
    %c0_i32_1 = arith.constant 0 : i32
    return %c0_i32, %c0_i32_0 : i32, i32
  }
  func.func @transform_3(%arg0: i32) -> (i32, i32) {
    %c0_i32 = arith.constant 0 : i32
    %c0_i32_0 = arith.constant 0 : i32
    return %arg0, %c0_i32 : i32, i32
  }
}

module attributes {stable_mosaic.version = 11 : i64} {
  func.func @_retention_kernel(%arg0: i32, %arg1: i32, %arg2: memref<1x1x8x8xf32, #tpu.memory_space<vmem>>, %arg3: memref<1x1x8x8xf32, #tpu.memory_space<vmem>>, %arg4: memref<1x1x8x8xf32, #tpu.memory_space<vmem>>, %arg5: memref<1x8x8xf32, #tpu.memory_space<vmem>>, %arg6: memref<1x1x8x8xf32, #tpu.memory_space<vmem>>) attributes {dimension_semantics = [#tpu.dimension_semantics<parallel>, #tpu.dimension_semantics<parallel>], iteration_bounds = array<i64: 2, 4>, scalar_prefetch = 0 : i64, scratch_operands = 0 : i64, tpu.core_type = #tpu.core_type<tc>, window_params = [{transform_indices = @transform_0, window_bounds = array<i64: 1, 1, 8, 8>}, {transform_indices = @transform_1, window_bounds = array<i64: 1, 1, 8, 8>}, {transform_indices = @transform_2, window_bounds = array<i64: 1, 1, 8, 8>}, {transform_indices = @transform_3, window_bounds = array<i64: 1, 8, 8>}, {transform_indices = @transform_4, window_bounds = array<i64: 1, 1, 8, 8>}]} {
    %c0 = arith.constant 0 : index
    %c0_0 = arith.constant 0 : index
    %c0_1 = arith.constant 0 : index
    %c0_2 = arith.constant 0 : index
    %0 = vector.load %arg2[%c0, %c0_0, %c0_1, %c0_2] : memref<1x1x8x8xf32, #tpu.memory_space<vmem>>, vector<1x1x8x8xf32>
    %1 = vector.shape_cast %0 : vector<1x1x8x8xf32> to vector<8x8xf32>
    %c0_3 = arith.constant 0 : index
    %c0_4 = arith.constant 0 : index
    %c0_5 = arith.constant 0 : index
    %c0_6 = arith.constant 0 : index
    %2 = vector.load %arg3[%c0_3, %c0_4, %c0_5, %c0_6] : memref<1x1x8x8xf32, #tpu.memory_space<vmem>>, vector<1x1x8x8xf32>
    %3 = vector.shape_cast %2 : vector<1x1x8x8xf32> to vector<8x8xf32>
    %c0_7 = arith.constant 0 : index
    %c0_8 = arith.constant 0 : index
    %c0_9 = arith.constant 0 : index
    %c0_10 = arith.constant 0 : index
    %4 = vector.load %arg4[%c0_7, %c0_8, %c0_9, %c0_10] : memref<1x1x8x8xf32, #tpu.memory_space<vmem>>, vector<1x1x8x8xf32>
    %5 = vector.shape_cast %4 : vector<1x1x8x8xf32> to vector<8x8xf32>
    %c0_11 = arith.constant 0 : index
    %c0_12 = arith.constant 0 : index
    %c0_13 = arith.constant 0 : index
    %6 = vector.load %arg5[%c0_11, %c0_12, %c0_13] : memref<1x8x8xf32, #tpu.memory_space<vmem>>, vector<1x8x8xf32>
    %7 = vector.shape_cast %6 : vector<1x8x8xf32> to vector<8x8xf32>
    %cst = arith.constant dense<0.000000e+00> : vector<8x8xf32>
    %8 = tpu.matmul %1, %3, %cst {dimension_numbers = #tpu.dot_dimension_numbers<[1], [0], [0], [1], [0, 0, 1, 1], [], []>} : vector<8x8xf32>, vector<8x8xf32>, vector<8x8xf32> -> vector<8x8xf32>
    %9 = arith.mulf %8, %7 : vector<8x8xf32>
    %cst_14 = arith.constant dense<0xFF800000> : vector<8xf32>
    %10 = vector.multi_reduction <maximumf>, %9, %cst_14 [1] : vector<8x8xf32> to vector<8xf32>
    %11 = vector.shape_cast %10 : vector<8xf32> to vector<8x1xf32>
    %12 = vector.broadcast %11 : vector<8x1xf32> to vector<8x8xf32>
    %13 = arith.subf %9, %12 : vector<8x8xf32>
    %14 = math.exp %13 : vector<8x8xf32>
    %cst_15 = arith.constant dense<0.000000e+00> : vector<8xf32>
    %15 = vector.multi_reduction <add>, %14, %cst_15 [1] : vector<8x8xf32> to vector<8xf32>
    %16 = vector.shape_cast %15 : vector<8xf32> to vector<8x1xf32>
    %17 = vector.broadcast %16 : vector<8x1xf32> to vector<8x8xf32>
    %18 = arith.divf %14, %17 : vector<8x8xf32>
    %cst_16 = arith.constant dense<0.000000e+00> : vector<8x8xf32>
    %19 = tpu.matmul %18, %5, %cst_16 {dimension_numbers = #tpu.dot_dimension_numbers<[1], [0], [0], [1], [0, 0, 1, 1], [], []>} : vector<8x8xf32>, vector<8x8xf32>, vector<8x8xf32> -> vector<8x8xf32>
    %20 = vector.shape_cast %19 : vector<8x8xf32> to vector<1x1x8x8xf32>
    %c0_17 = arith.constant 0 : index
    %c0_18 = arith.constant 0 : index
    %c0_19 = arith.constant 0 : index
    %c0_20 = arith.constant 0 : index
    %21 = vector.load %arg6[%c0_17, %c0_18, %c0_19, %c0_20] : memref<1x1x8x8xf32, #tpu.memory_space<vmem>>, vector<1x1x8x8xf32>
    tpu.vector_store %arg6[%c0_17, %c0_18, %c0_19, %c0_20], %20 {strides = array<i32>} : memref<1x1x8x8xf32, #tpu.memory_space<vmem>>, vector<1x1x8x8xf32>,
    return
  }
  func.func @transform_0(%arg0: i32, %arg1: i32) -> (i32, i32, i32, i32) {
    %c0_i32 = arith.constant 0 : i32
    %c0_i32_0 = arith.constant 0 : i32
    %c0_i32_1 = arith.constant 0 : i32
    return %arg0, %arg1, %c0_i32, %c0_i32_0 : i32, i32, i32, i32
  }
  func.func @transform_1(%arg0: i32, %arg1: i32) -> (i32, i32, i32, i32) {
    %c0_i32 = arith.constant 0 : i32
    %c0_i32_0 = arith.constant 0 : i32
    %c0_i32_1 = arith.constant 0 : i32
    return %arg0, %arg1, %c0_i32, %c0_i32_0 : i32, i32, i32, i32
  }
  func.func @transform_2(%arg0: i32, %arg1: i32) -> (i32, i32, i32, i32) {
    %c0_i32 = arith.constant 0 : i32
    %c0_i32_0 = arith.constant 0 : i32
    %c0_i32_1 = arith.constant 0 : i32
    return %arg0, %arg1, %c0_i32, %c0_i32_0 : i32, i32, i32, i32
  }
  func.func @transform_3(%arg0: i32, %arg1: i32) -> (i32, i32, i32) {
    %c0_i32 = arith.constant 0 : i32
    %c0_i32_0 = arith.constant 0 : i32
    %c0_i32_1 = arith.constant 0 : i32
    return %arg1, %c0_i32, %c0_i32_0 : i32, i32, i32
  }
  func.func @transform_4(%arg0: i32, %arg1: i32) -> (i32, i32, i32, i32) {
    %c0_i32 = arith.constant 0 : i32
    %c0_i32_0 = arith.constant 0 : i32
    %c0_i32_1 = arith.constant 0 : i32
    return %arg0, %arg1, %c0_i32, %c0_i32_0 : i32, i32, i32, i32
  }
}

module attributes {stable_mosaic.version = 11 : i64} {
  func.func @_gated_output_kernel(%arg0: i32, %arg1: memref<16x32xf32, #tpu.memory_space<vmem>>, %arg2: memref<16x32xf32, #tpu.memory_space<vmem>>, %arg3: memref<16x32xf32, #tpu.memory_space<vmem>>, %arg4: memref<32x32xf32, #tpu.memory_space<vmem>>, %arg5: memref<16x32xf32, #tpu.memory_space<vmem>>) attributes {dimension_semantics = [#tpu.dimension_semantics<parallel>], iteration_bounds = array<i64: 1>, scalar_prefetch = 0 : i64, scratch_operands = 0 : i64, tpu.core_type = #tpu.core_type<tc>, window_params = [{transform_indices = @transform_0, window_bounds = array<i64: 16, 32>}, {transform_indices = @transform_1, window_bounds = array<i64: 16, 32>}, {transform_indices = @transform_2, window_bounds = array<i64: 16, 32>}, {pipeline_mode = #tpu.pipeline_mode<synchronous>, transform_indices = @transform_3, window_bounds = array<i64: 32, 32>}, {transform_indices = @transform_4, window_bounds = array<i64: 16, 32>}]} {
    %c0 = arith.constant 0 : index
    %c0_0 = arith.constant 0 : index
    %0 = vector.load %arg1[%c0, %c0_0] : memref<16x32xf32, #tpu.memory_space<vmem>>, vector<16x32xf32>
    %c0_1 = arith.constant 0 : index
    %c0_2 = arith.constant 0 : index
    %1 = vector.load %arg2[%c0_1, %c0_2] : memref<16x32xf32, #tpu.memory_space<vmem>>, vector<16x32xf32>
    %2 = arith.mulf %0, %1 : vector<16x32xf32>
    %cst = arith.constant 0.000000e+00 : f32
    %3 = vector.broadcast %cst : f32 to vector<16x32xf32>
    %4 = arith.subf %3, %2 : vector<16x32xf32>
    %5 = math.exp %4 : vector<16x32xf32>
    %cst_3 = arith.constant 1.000000e+00 : f32
    %6 = vector.broadcast %cst_3 : f32 to vector<16x32xf32>
    %7 = arith.addf %6, %5 : vector<16x32xf32>
    %cst_4 = arith.constant 1.000000e+00 : f32
    %8 = vector.broadcast %cst_4 : f32 to vector<16x32xf32>
    %9 = arith.divf %8, %7 : vector<16x32xf32>
    %10 = arith.mulf %2, %9 : vector<16x32xf32>
    %c0_5 = arith.constant 0 : index
    %c0_6 = arith.constant 0 : index
    %11 = vector.load %arg4[%c0_5, %c0_6] : memref<32x32xf32, #tpu.memory_space<vmem>>, vector<32x32xf32>
    %cst_7 = arith.constant dense<0.000000e+00> : vector<16x32xf32>
    %12 = tpu.matmul %10, %11, %cst_7 {dimension_numbers = #tpu.dot_dimension_numbers<[1], [0], [0], [1], [0, 0, 1, 1], [], []>} : vector<16x32xf32>, vector<32x32xf32>, vector<16x32xf32> -> vector<16x32xf32>
    %c0_8 = arith.constant 0 : index
    %c0_9 = arith.constant 0 : index
    %13 = vector.load %arg3[%c0_8, %c0_9] : memref<16x32xf32, #tpu.memory_space<vmem>>, vector<16x32xf32>
    %14 = arith.addf %13, %12 : vector<16x32xf32>
    %c0_10 = arith.constant 0 : index
    %c0_11 = arith.constant 0 : index
    %15 = vector.load %arg5[%c0_10, %c0_11] : memref<16x32xf32, #tpu.memory_space<vmem>>, vector<16x32xf32>
    tpu.vector_store %arg5[%c0_10, %c0_11], %14 {strides = array<i32>} : memref<16x32xf32, #tpu.memory_space<vmem>>, vector<16x32xf32>,
    return
  }
  func.func @transform_0(%arg0: i32) -> (i32, i32) {
    %c0_i32 = arith.constant 0 : i32
    %c0_i32_0 = arith.constant 0 : i32
    return %arg0, %c0_i32 : i32, i32
  }
  func.func @transform_1(%arg0: i32) -> (i32, i32) {
    %c0_i32 = arith.constant 0 : i32
    %c0_i32_0 = arith.constant 0 : i32
    return %arg0, %c0_i32 : i32, i32
  }
  func.func @transform_2(%arg0: i32) -> (i32, i32) {
    %c0_i32 = arith.constant 0 : i32
    %c0_i32_0 = arith.constant 0 : i32
    return %arg0, %c0_i32 : i32, i32
  }
  func.func @transform_3(%arg0: i32) -> (i32, i32) {
    %c0_i32 = arith.constant 0 : i32
    %c0_i32_0 = arith.constant 0 : i32
    %c0_i32_1 = arith.constant 0 : i32
    return %c0_i32, %c0_i32_0 : i32, i32
  }
  func.func @transform_4(%arg0: i32) -> (i32, i32) {
    %c0_i32 = arith.constant 0 : i32
    %c0_i32_0 = arith.constant 0 : i32
    return %arg0, %c0_i32 : i32, i32
  }
}

module attributes {stable_mosaic.version = 11 : i64} {
  func.func @_linear_kernel(%arg0: i32, %arg1: memref<16x32xf32, #tpu.memory_space<vmem>>, %arg2: memref<32x64xf32, #tpu.memory_space<vmem>>, %arg3: memref<1x64xf32, #tpu.memory_space<vmem>>, %arg4: memref<16x64xf32, #tpu.memory_space<vmem>>) attributes {dimension_semantics = [#tpu.dimension_semantics<parallel>], iteration_bounds = array<i64: 1>, scalar_prefetch = 0 : i64, scratch_operands = 0 : i64, tpu.core_type = #tpu.core_type<tc>, window_params = [{transform_indices = @transform_0, window_bounds = array<i64: 16, 32>}, {pipeline_mode = #tpu.pipeline_mode<synchronous>, transform_indices = @transform_1, window_bounds = array<i64: 32, 64>}, {pipeline_mode = #tpu.pipeline_mode<synchronous>, transform_indices = @transform_2, window_bounds = array<i64: 1, 64>}, {transform_indices = @transform_3, window_bounds = array<i64: 16, 64>}]} {
    %c0 = arith.constant 0 : index
    %c0_0 = arith.constant 0 : index
    %0 = vector.load %arg1[%c0, %c0_0] : memref<16x32xf32, #tpu.memory_space<vmem>>, vector<16x32xf32>
    %c0_1 = arith.constant 0 : index
    %c0_2 = arith.constant 0 : index
    %1 = vector.load %arg2[%c0_1, %c0_2] : memref<32x64xf32, #tpu.memory_space<vmem>>, vector<32x64xf32>
    %cst = arith.constant dense<0.000000e+00> : vector<16x64xf32>
    %2 = tpu.matmul %0, %1, %cst {dimension_numbers = #tpu.dot_dimension_numbers<[1], [0], [0], [1], [0, 0, 1, 1], [], []>} : vector<16x32xf32>, vector<32x64xf32>, vector<16x64xf32> -> vector<16x64xf32>
    %c0_3 = arith.constant 0 : index
    %c0_4 = arith.constant 0 : index
    %3 = vector.load %arg3[%c0_3, %c0_4] : memref<1x64xf32, #tpu.memory_space<vmem>>, vector<1x64xf32>
    %4 = vector.broadcast %3 : vector<1x64xf32> to vector<16x64xf32>
    %5 = arith.addf %2, %4 : vector<16x64xf32>
    %cst_5 = arith.constant 0.000000e+00 : f32
    %6 = vector.broadcast %cst_5 : f32 to vector<16x64xf32>
    %7 = arith.maximumf %5, %6 : vector<16x64xf32>
    %c0_6 = arith.constant 0 : index
    %c0_7 = arith.constant 0 : index
    %8 = vector.load %arg4[%c0_6, %c0_7] : memref<16x64xf32, #tpu.memory_space<vmem>>, vector<16x64xf32>
    tpu.vector_store %arg4[%c0_6, %c0_7], %7 {strides = array<i32>} : memref<16x64xf32, #tpu.memory_space<vmem>>, vector<16x64xf32>,
    return
  }
  func.func @transform_0(%arg0: i32) -> (i32, i32) {
    %c0_i32 = arith.constant 0 : i32
    %c0_i32_0 = arith.constant 0 : i32
    return %arg0, %c0_i32 : i32, i32
  }
  func.func @transform_1(%arg0: i32) -> (i32, i32) {
    %c0_i32 = arith.constant 0 : i32
    %c0_i32_0 = arith.constant 0 : i32
    %c0_i32_1 = arith.constant 0 : i32
    return %c0_i32, %c0_i32_0 : i32, i32
  }
  func.func @transform_2(%arg0: i32) -> (i32, i32) {
    %c0_i32 = arith.constant 0 : i32
    %c0_i32_0 = arith.constant 0 : i32
    %c0_i32_1 = arith.constant 0 : i32
    return %c0_i32, %c0_i32_0 : i32, i32
  }
  func.func @transform_3(%arg0: i32) -> (i32, i32) {
    %c0_i32 = arith.constant 0 : i32
    %c0_i32_0 = arith.constant 0 : i32
    return %arg0, %c0_i32 : i32, i32
  }
}

module attributes {stable_mosaic.version = 11 : i64} {
  func.func @_groupnorm_kernel(%arg0: i32, %arg1: memref<64x8xf32, #tpu.memory_space<vmem>>, %arg2: memref<8x4xf32, #tpu.memory_space<vmem>>, %arg3: memref<4x8xf32, #tpu.memory_space<vmem>>, %arg4: memref<1x8xf32, #tpu.memory_space<vmem>>, %arg5: memref<1x8xf32, #tpu.memory_space<vmem>>, %arg6: memref<64x8xf32, #tpu.memory_space<vmem>>) attributes {dimension_semantics = [#tpu.dimension_semantics<parallel>], iteration_bounds = array<i64: 1>, scalar_prefetch = 0 : i64, scratch_operands = 0 : i64, tpu.core_type = #tpu.core_type<tc>, window_params = [{transform_indices = @transform_0, window_bounds = array<i64: 64, 8>}, {pipeline_mode = #tpu.pipeline_mode<synchronous>, transform_indices = @transform_1, window_bounds = array<i64: 8, 4>}, {pipeline_mode = #tpu.pipeline_mode<synchronous>, transform_indices = @transform_2, window_bounds = array<i64: 4, 8>}, {pipeline_mode = #tpu.pipeline_mode<synchronous>, transform_indices = @transform_3, window_bounds = array<i64: 1, 8>}, {pipeline_mode = #tpu.pipeline_mode<synchronous>, transform_indices = @transform_4, window_bounds = array<i64: 1, 8>}, {transform_indices = @transform_5, window_bounds = array<i64: 64, 8>}]} {
    %c0 = arith.constant 0 : index
    %c0_0 = arith.constant 0 : index
    %0 = vector.load %arg1[%c0, %c0_0] : memref<64x8xf32, #tpu.memory_space<vmem>>, vector<64x8xf32>
    %c0_1 = arith.constant 0 : index
    %c0_2 = arith.constant 0 : index
    %1 = vector.load %arg2[%c0_1, %c0_2] : memref<8x4xf32, #tpu.memory_space<vmem>>, vector<8x4xf32>
    %c0_3 = arith.constant 0 : index
    %c0_4 = arith.constant 0 : index
    %2 = vector.load %arg3[%c0_3, %c0_4] : memref<4x8xf32, #tpu.memory_space<vmem>>, vector<4x8xf32>
    %cst = arith.constant dense<0.000000e+00> : vector<64x4xf32>
    %3 = tpu.matmul %0, %1, %cst {dimension_numbers = #tpu.dot_dimension_numbers<[1], [0], [0], [1], [0, 0, 1, 1], [], []>} : vector<64x8xf32>, vector<8x4xf32>, vector<64x4xf32> -> vector<64x4xf32>
    %cst_5 = arith.constant 2.000000e+00 : f32
    %4 = vector.broadcast %cst_5 : f32 to vector<64x4xf32>
    %5 = arith.divf %3, %4 : vector<64x4xf32>
    %6 = arith.mulf %0, %0 : vector<64x8xf32>
    %cst_6 = arith.constant dense<0.000000e+00> : vector<64x4xf32>
    %7 = tpu.matmul %6, %1, %cst_6 {dimension_numbers = #tpu.dot_dimension_numbers<[1], [0], [0], [1], [0, 0, 1, 1], [], []>} : vector<64x8xf32>, vector<8x4xf32>, vector<64x4xf32> -> vector<64x4xf32>
    %cst_7 = arith.constant 2.000000e+00 : f32
    %8 = vector.broadcast %cst_7 : f32 to vector<64x4xf32>
    %9 = arith.divf %7, %8 : vector<64x4xf32>
    %10 = arith.mulf %5, %5 : vector<64x4xf32>
    %11 = arith.subf %9, %10 : vector<64x4xf32>
    %cst_8 = arith.constant dense<0.000000e+00> : vector<64x8xf32>
    %12 = tpu.matmul %5, %2, %cst_8 {dimension_numbers = #tpu.dot_dimension_numbers<[1], [0], [0], [1], [0, 0, 1, 1], [], []>} : vector<64x4xf32>, vector<4x8xf32>, vector<64x8xf32> -> vector<64x8xf32>
    %cst_9 = arith.constant dense<0.000000e+00> : vector<64x8xf32>
    %13 = tpu.matmul %11, %2, %cst_9 {dimension_numbers = #tpu.dot_dimension_numbers<[1], [0], [0], [1], [0, 0, 1, 1], [], []>} : vector<64x4xf32>, vector<4x8xf32>, vector<64x8xf32> -> vector<64x8xf32>
    %14 = arith.subf %0, %12 : vector<64x8xf32>
    %cst_10 = arith.constant 9.99999974E-6 : f32
    %15 = vector.broadcast %cst_10 : f32 to vector<64x8xf32>
    %16 = arith.addf %13, %15 : vector<64x8xf32>
    %17 = math.rsqrt %16 : vector<64x8xf32>
    %18 = arith.mulf %14, %17 : vector<64x8xf32>
    %c0_11 = arith.constant 0 : index
    %c0_12 = arith.constant 0 : index
    %19 = vector.load %arg4[%c0_11, %c0_12] : memref<1x8xf32, #tpu.memory_space<vmem>>, vector<1x8xf32>
    %20 = vector.broadcast %19 : vector<1x8xf32> to vector<64x8xf32>
    %21 = arith.mulf %18, %20 : vector<64x8xf32>
    %c0_13 = arith.constant 0 : index
    %c0_14 = arith.constant 0 : index
    %22 = vector.load %arg5[%c0_13, %c0_14] : memref<1x8xf32, #tpu.memory_space<vmem>>, vector<1x8xf32>
    %23 = vector.broadcast %22 : vector<1x8xf32> to vector<64x8xf32>
    %24 = arith.addf %21, %23 : vector<64x8xf32>
    %c0_15 = arith.constant 0 : index
    %c0_16 = arith.constant 0 : index
    %25 = vector.load %arg6[%c0_15, %c0_16] : memref<64x8xf32, #tpu.memory_space<vmem>>, vector<64x8xf32>
    tpu.vector_store %arg6[%c0_15, %c0_16], %24 {strides = array<i32>} : memref<64x8xf32, #tpu.memory_space<vmem>>, vector<64x8xf32>,
    return
  }
  func.func @transform_0(%arg0: i32) -> (i32, i32) {
    %c0_i32 = arith.constant 0 : i32
    %c0_i32_0 = arith.constant 0 : i32
    return %arg0, %c0_i32 : i32, i32
  }
  func.func @transform_1(%arg0: i32) -> (i32, i32) {
    %c0_i32 = arith.constant 0 : i32
    %c0_i32_0 = arith.constant 0 : i32
    %c0_i32_1 = arith.constant 0 : i32
    return %c0_i32, %c0_i32_0 : i32, i32
  }
  func.func @transform_2(%arg0: i32) -> (i32, i32) {
    %c0_i32 = arith.constant 0 : i32
    %c0_i32_0 = arith.constant 0 : i32
    %c0_i32_1 = arith.constant 0 : i32
    return %c0_i32, %c0_i32_0 : i32, i32
  }
  func.func @transform_3(%arg0: i32) -> (i32, i32) {
    %c0_i32 = arith.constant 0 : i32
    %c0_i32_0 = arith.constant 0 : i32
    %c0_i32_1 = arith.constant 0 : i32
    return %c0_i32, %c0_i32_0 : i32, i32
  }
  func.func @transform_4(%arg0: i32) -> (i32, i32) {
    %c0_i32 = arith.constant 0 : i32
    %c0_i32_0 = arith.constant 0 : i32
    %c0_i32_1 = arith.constant 0 : i32
    return %c0_i32, %c0_i32_0 : i32, i32
  }
  func.func @transform_5(%arg0: i32) -> (i32, i32) {
    %c0_i32 = arith.constant 0 : i32
    %c0_i32_0 = arith.constant 0 : i32
    return %arg0, %c0_i32 : i32, i32
  }
}

module attributes {stable_mosaic.version = 11 : i64} {
  func.func @_residual_linear_kernel(%arg0: i32, %arg1: memref<16x64xf32, #tpu.memory_space<vmem>>, %arg2: memref<16x32xf32, #tpu.memory_space<vmem>>, %arg3: memref<64x32xf32, #tpu.memory_space<vmem>>, %arg4: memref<1x32xf32, #tpu.memory_space<vmem>>, %arg5: memref<16x32xf32, #tpu.memory_space<vmem>>) attributes {dimension_semantics = [#tpu.dimension_semantics<parallel>], iteration_bounds = array<i64: 1>, scalar_prefetch = 0 : i64, scratch_operands = 0 : i64, tpu.core_type = #tpu.core_type<tc>, window_params = [{transform_indices = @transform_0, window_bounds = array<i64: 16, 64>}, {transform_indices = @transform_1, window_bounds = array<i64: 16, 32>}, {pipeline_mode = #tpu.pipeline_mode<synchronous>, transform_indices = @transform_2, window_bounds = array<i64: 64, 32>}, {pipeline_mode = #tpu.pipeline_mode<synchronous>, transform_indices = @transform_3, window_bounds = array<i64: 1, 32>}, {transform_indices = @transform_4, window_bounds = array<i64: 16, 32>}]} {
    %c0 = arith.constant 0 : index
    %c0_0 = arith.constant 0 : index
    %0 = vector.load %arg1[%c0, %c0_0] : memref<16x64xf32, #tpu.memory_space<vmem>>, vector<16x64xf32>
    %c0_1 = arith.constant 0 : index
    %c0_2 = arith.constant 0 : index
    %1 = vector.load %arg3[%c0_1, %c0_2] : memref<64x32xf32, #tpu.memory_space<vmem>>, vector<64x32xf32>
    %cst = arith.constant dense<0.000000e+00> : vector<16x32xf32>
    %2 = tpu.matmul %0, %1, %cst {dimension_numbers = #tpu.dot_dimension_numbers<[1], [0], [0], [1], [0, 0, 1, 1], [], []>} : vector<16x64xf32>, vector<64x32xf32>, vector<16x32xf32> -> vector<16x32xf32>
    %c0_3 = arith.constant 0 : index
    %c0_4 = arith.constant 0 : index
    %3 = vector.load %arg2[%c0_3, %c0_4] : memref<16x32xf32, #tpu.memory_space<vmem>>, vector<16x32xf32>
    %4 = arith.addf %3, %2 : vector<16x32xf32>
    %c0_5 = arith.constant 0 : index
    %c0_6 = arith.constant 0 : index
    %5 = vector.load %arg4[%c0_5, %c0_6] : memref<1x32xf32, #tpu.memory_space<vmem>>, vector<1x32xf32>
    %6 = vector.broadcast %5 : vector<1x32xf32> to vector<16x32xf32>
    %7 = arith.addf %4, %6 : vector<16x32xf32>
    %c0_7 = arith.constant 0 : index
    %c0_8 = arith.constant 0 : index
    %8 = vector.load %arg5[%c0_7, %c0_8] : memref<16x32xf32, #tpu.memory_space<vmem>>, vector<16x32xf32>
    tpu.vector_store %arg5[%c0_7, %c0_8], %7 {strides = array<i32>} : memref<16x32xf32, #tpu.memory_space<vmem>>, vector<16x32xf32>,
    return
  }
  func.func @transform_0(%arg0: i32) -> (i32, i32) {
    %c0_i32 = arith.constant 0 : i32
    %c0_i32_0 = arith.constant 0 : i32
    return %arg0, %c0_i32 : i32, i32
  }
  func.func @transform_1(%arg0: i32) -> (i32, i32) {
    %c0_i32 = arith.constant 0 : i32
    %c0_i32_0 = arith.constant 0 : i32
    return %arg0, %c0_i32 : i32, i32
  }
  func.func @transform_2(%arg0: i32) -> (i32, i32) {
    %c0_i32 = arith.constant 0 : i32
    %c0_i32_0 = arith.constant 0 : i32
    %c0_i32_1 = arith.constant 0 : i32
    return %c0_i32, %c0_i32_0 : i32, i32
  }
  func.func @transform_3(%arg0: i32) -> (i32, i32) {
    %c0_i32 = arith.constant 0 : i32
    %c0_i32_0 = arith.constant 0 : i32
    %c0_i32_1 = arith.constant 0 : i32
    return %c0_i32, %c0_i32_0 : i32, i32
  }
  func.func @transform_4(%arg0: i32) -> (i32, i32) {
    %c0_i32 = arith.constant 0 : i32
    %c0_i32_0 = arith.constant 0 : i32
    return %arg0, %c0_i32 : i32, i32
  }
}

</mosaic_0001>

<bundles_post_ra>
// kernel: encoder_block_forward.21
= control target key start
LH: loop header
LB: loop body
LE: loop exit
PB: predicated region body
PF: predicated region fallthrough
CT: control target
= control target key end

     0   :  { %vm24_vm0 = vcmask 261120   ;;  %s114_s1 = inlined_call_operand.vmem [shape: f32[32,32], index: 1, kind: input, shape index: {}]   ;;  %s115_s2 = inlined_call_operand.vmem [shape: f32[1,32], index: 2, kind: input, shape index: {}]   ;;  %s116_s0 = inlined_call_operand.vmem [shape: f32[16,32], index: 0, kind: input, shape index: {}]   ;;  %s117_s3 = inlined_call_operand.vmem [shape: f32[16,32], index: 3, kind: output, shape index: {}]  }
   0x1   :  { %v19_v0 = vld [vmem:[%s114_s1 + $0x18] sm:$0xff]  ;;  %v18_v1 = vld [vmem:[%s114_s1 + $0x10] sm:$0xff]  ;;  %v17_v2 = vld [vmem:[%s114_s1 + $0x8] sm:$0xff] }
   0x2   :  { %43 = vmatpush.msra.mxu0 %v19_v0  ;;  %62 = vmatpush.msra.mxu1 %v19_v0  ;;  %v16_v3 = vld [vmem:[%s114_s1] sm:$0xff]  ;;  %v15_v5 = vld [vmem:[%s116_s0 + $0x8] sm:$0xff] }
   0x3   :  { %v14_v4 = vld [vmem:[%s116_s0] sm:$0xff] }
   0x4   :  { %44 = vmatpush.msra.mxu0 %v18_v1  ;;  %63 = vmatpush.msra.mxu1 %v18_v1  ;;  %v66_v6 = vld [vmem:[%s115_s2] ss:$0 sm:$0xff] }
   0x6   :  { %45 = vmatpush.msra.mxu0 %v17_v2  ;;  %64 = vmatpush.msra.mxu1 %v17_v2 }
   0x8   :  { %46 = vmatpush.msra.mxu0 %v16_v3  ;;  %65 = vmatpush.msra.mxu1 %v16_v3 }
   0x9   :  { %60 = vmatmul.msk.f32.vlgmr.msra.gmra.mxu0 %vm24_vm0, %v14_v4  ;;  %61 = vmatmul.msk.f32.vlgmr.msra.gmra.mxu1 %vm24_vm0, %v15_v5 }
  0x86   :  { %v48_v7 = vpop.f32.mrf.mxu0  ;;  %v51_v8 = vpop.f32.mrf.mxu1 }
  0x87   :  { %v49_v9 = vadd.f32 %v66_v6, %v48_v7  ;;  %v52_v10 = vadd.f32 %v66_v6, %v51_v8 }
  0x89   :  { %54 = vst.msk [vmem:[%s117_s3] sm:$0xff] %vm24_vm0, %v49_v9 }
  0x8a   :  { %55 = vst.msk [vmem:[%s117_s3 + $0x8] sm:$0xff] %vm24_vm0, %v52_v10 }

// kernel: encoder_block_forward.14
= control target key start
LH: loop header
LB: loop body
LE: loop exit
PB: predicated region body
PF: predicated region fallthrough
CT: control target
= control target key end

     0   :  { %8 = vsyncpa [#allocation3], 0  ;;  %s113_s15 = smov [#allocation2]   ;;  %s114_s17 = smov 128   ;;  %s154_s0 = inlined_call_operand.vmem [shape: f32[16,32], index: 0, kind: input, shape index: {}]   ;;  %s155_s1 = inlined_call_operand.hbm [shape: f32[32,32], index: 1, kind: input, shape index: {}]   ;;  %s156_s2 = inlined_call_operand.vmem [shape: f32[1,32], index: 2, kind: input, shape index: {}]   ;;  %s157_s3 = inlined_call_operand.vmem [shape: f32[16,32], index: 3, kind: output, shape index: {}]  }
   0x1   :  { %s15_s14 = sshll.u32 %s155_s1, 4  ;;  %s17_s16 = sshll.u32 %s113_s15, 4  ;;  %s16_s14 = int_to_ptr.hbm [resolvable:$true] %s15_s14  ;;  %s18_s16 = int_to_ptr.vmem [resolvable:$true] %s17_s16 }
   0x2   :  { %s115_s18 = smov 8  }
   0x3   :  { %23 = dma.hbm_to_vmem [thread:$0]  %s16_s14, 512, %s18_s16, [#allocation3], %s114_s17, %s114_s17, %s115_s18  }
   0x4   :  { %111 = dma.done.wait [#allocation3], 512  }
   0x5   :  { %112 = vsyncadd [#allocation3], 4294966784  ;;  %v35_v0 = vld [vmem:[#allocation2 + $0x18] sm:$0xff]  ;;  %v34_v1 = vld [vmem:[#allocation2 + $0x10] sm:$0xff]  ;;  %vm40_vm0 = vcmask 261120  }
   0x6   :  { %59 = vmatpush.msra.mxu0 %v35_v0  ;;  %79 = vmatpush.msra.mxu1 %v35_v0  ;;  %v33_v2 = vld [vmem:[#allocation2 + $0x8] sm:$0xff]  ;;  %v32_v3 = vld [vmem:[#allocation2] sm:$0xff] }
   0x7   :  { %v30_v4 = vld [vmem:[%s154_s0] sm:$0xff]  ;;  %v31_v5 = vld [vmem:[%s154_s0 + $0x8] sm:$0xff] }
   0x8   :  { %60 = vmatpush.msra.mxu0 %v34_v1  ;;  %80 = vmatpush.msra.mxu1 %v34_v1  ;;  %v86_v6 = vld [vmem:[%s156_s2] ss:$0 sm:$0xff] }
   0xa   :  { %61 = vmatpush.msra.mxu0 %v33_v2  ;;  %81 = vmatpush.msra.mxu1 %v33_v2 }
   0xc   :  { %62 = vmatpush.msra.mxu0 %v32_v3  ;;  %82 = vmatpush.msra.mxu1 %v32_v3 }
   0xd   :  { %77 = vmatmul.msk.f32.vlgmr.msra.gmra.mxu0 %vm40_vm0, %v30_v4  ;;  %78 = vmatmul.msk.f32.vlgmr.msra.gmra.mxu1 %vm40_vm0, %v31_v5 }
  0x8a   :  { %v64_v7 = vpop.f32.mrf.mxu0  ;;  %v67_v8 = vpop.f32.mrf.mxu1 }
  0x8b   :  { %v65_v9 = vadd.f32 %v86_v6, %v64_v7  ;;  %v68_v10 = vadd.f32 %v86_v6, %v67_v8 }
  0x8d   :  { %70 = vst.msk [vmem:[%s157_s3] sm:$0xff] %vm40_vm0, %v65_v9 }
  0x8e   :  { %71 = vst.msk [vmem:[%s157_s3 + $0x8] sm:$0xff] %vm40_vm0, %v68_v10 }
  0x8f   :  { %76 = vsyncpa [#allocation3], 1 }

// kernel: encoder_block_forward.13
= control target key start
LH: loop header
LB: loop body
LE: loop exit
PB: predicated region body
PF: predicated region fallthrough
CT: control target
= control target key end

     0   :  { %vm16_vm0 = vcmask 261120   ;;  %v141_v4 = vmov 32.0   ;;  %v142_v24 = vmov 31.0   ;;  %s193_s0 = inlined_call_operand.vmem [shape: f32[16,32], index: 0, kind: input, shape index: {}]   ;;  %s194_s1 = inlined_call_operand.vmem [shape: f32[1,32], index: 1, kind: input, shape index: {}]   ;;  %s195_s2 = inlined_call_operand.vmem [shape: f32[1,32], index: 2, kind: input, shape index: {}]   ;;  %s196_s3 = inlined_call_operand.vmem [shape: f32[16,32], index: 3, kind: output, shape index: {}]  }
   0x1   :  { %v14_v0 = vld [vmem:[%s193_s0] sm:$0xff]  ;;  %v15_v2 = vld [vmem:[%s193_s0 + $0x8] sm:$0xff]  ;;  %129 = vrcp.f32 %v141_v4 }
   0x2   :  { %v17_v1 = vsel %vm16_vm0, %v14_v0, 0.0  ;;  %v20_v3 = vsel %vm16_vm0, %v15_v2, 0.0  ;;  %v127_v12 = vld [vmem:[%s194_s1] ss:$0 sm:$0xff]  ;;  %131 = vrcp.f32 %v142_v24 }
   0x3   :  { %18 = vadd.xlane.f32.xlu0 %v17_v1 }
   0x7   :  { %v130_v5 = vpop.eup %129 }
   0x8   :  { %v24_v6 = vmul.f32 32.0, %v130_v5  ;;  %vm28_vm1 = vweird.f32 %v130_v5  ;;  %v132_v25 = vpop.eup %131 }
   0x9   :  { %v43_v26 = vmul.f32 31.0, %v132_v25  ;;  %vm47_vm2 = vweird.f32 %v132_v25 }
   0xa   :  { %v25_v7 = vsub.f32 1.0, %v24_v6 }
   0xb   :  { %21 = vadd.xlane.f32.xlu0 %v20_v3  ;;  %v44_v27 = vsub.f32 1.0, %v43_v26 }
   0xc   :  { %v26_v8 = vmul.f32 %v130_v5, %v25_v7 }
   0xd   :  { %v45_v28 = vmul.f32 %v132_v25, %v44_v27 }
   0xe   :  { %v27_v9 = vadd.f32 %v130_v5, %v26_v8 }
   0xf   :  { %v46_v29 = vadd.f32 %v132_v25, %v45_v28 }
  0x10   :  { %v29_v10 = vsel %vm28_vm1, %v130_v5, %v27_v9 }
  0x11   :  { %v48_v30 = vsel %vm47_vm2, %v132_v25, %v46_v29 }
  0x76   :  { %v19_v11 = vpop.xlane.xlu0 %18 }
  0x77   :  { %v30_v13 = vmul.f32 %v29_v10, %v19_v11 }
  0x79   :  { %v32_v14 = vsub.f32 %v14_v0, %v30_v13 }
  0x7b   :  { %v174_v15 = vmul.f32 %v127_v12, %v32_v14  ;;  %v34_v16 = vmul.f32 %v32_v14, %v32_v14 }
  0x7d   :  { %v36_v17 = vsel %vm16_vm0, %v34_v16, 0.0 }
  0x7e   :  { %37 = vadd.xlane.f32.xlu1 %v36_v17  ;;  %v22_v18 = vpop.xlane.xlu0 %21 }
  0x7f   :  { %v31_v19 = vmul.f32 %v29_v10, %v22_v18 }
  0x81   :  { %v33_v20 = vsub.f32 %v15_v2, %v31_v19  ;;  %v128_v2 = vld [vmem:[%s195_s2] ss:$0 sm:$0xff] }
  0x83   :  { %v177_v21 = vmul.f32 %v127_v12, %v33_v20  ;;  %v35_v22 = vmul.f32 %v33_v20, %v33_v20 }
  0x85   :  { %v39_v23 = vsel %vm16_vm0, %v35_v22, 0.0 }
  0x86   :  { %40 = vadd.xlane.f32.xlu1 %v39_v23 }
  0xf1   :  { %v38_v31 = vpop.xlane.xlu1 %37 }
  0xf2   :  { %v49_v32 = vmul.f32 %v48_v30, %v38_v31 }
  0xf4   :  { %133 = vrsqrt.f32 %v49_v32  ;;  %vm58_vm3 = vcmp.eq.f32.partialorder %v49_v32, inf  ;;  %v61_v45 = vand.u32 2147483648, %v49_v32  ;;  %vm60_vm4 = vcmp.eq.f32.partialorder %v49_v32, 0.0 }
  0xf9   :  { %v41_v33 = vpop.xlane.xlu1 %40 }
  0xfa   :  { %v134_v34 = vpop.eup %133  ;;  %v50_v35 = vmul.f32 %v48_v30, %v41_v33 }
  0xfb   :  { %v52_v36 = vmul.f32 %v134_v34, %v49_v32 }
  0xfc   :  { %135 = vrsqrt.f32 %v50_v35  ;;  %vm70_vm5 = vcmp.eq.f32.partialorder %v50_v35, inf  ;;  %v73_v53 = vand.u32 2147483648, %v50_v35  ;;  %vm72_vm6 = vcmp.eq.f32.partialorder %v50_v35, 0.0 }
  0xfd   :  { %v53_v37 = vmul.f32 %v134_v34, %v52_v36 }
  0xff   :  { %v54_v38 = vmul.f32 0.5, %v53_v37 }
 0x101   :  { %v55_v39 = vsub.f32 1.5, %v54_v38 }
 0x102   :  { %v136_v40 = vpop.eup %135 }
 0x103   :  { %v56_v41 = vmul.f32 %v134_v34, %v55_v39  ;;  %v64_v42 = vmul.f32 %v136_v40, %v50_v35 }
 0x105   :  { %v57_v43 = vmul.f32 %v56_v41, %v49_v32  ;;  %v65_v44 = vmul.f32 %v136_v40, %v64_v42 }
 0x107   :  { %v59_v46 = vsel %vm58_vm3, %v49_v32, %v57_v43  ;;  %v66_v47 = vmul.f32 0.5, %v65_v44 }
 0x108   :  { %v62_v48 = vsel %vm60_vm4, %v61_v45, %v59_v46 }
 0x109   :  { %v81_v49 = vadd.f32 1e-06, %v62_v48  ;;  %v67_v50 = vsub.f32 1.5, %v66_v47 }
 0x10b   :  { %137 = vrcp.f32 %v81_v49  ;;  %v68_v51 = vmul.f32 %v136_v40, %v67_v50  ;;  %v94_v60 = vand.u32 2147483648, %v81_v49  ;;  %v92_v62 = vand.u32 2147483647, %v81_v49 }
 0x10c   :  { %vm88_vm8 = vweird.f32 %v81_v49 }
 0x10d   :  { %v69_v52 = vmul.f32 %v68_v51, %v50_v35  ;;  %v95_v0 = vor.u32 1.1754944e-38, %v94_v60  ;;  %vm93_vm10 = vcmp.eq.f32.partialorder %v92_v62, 8.507059e+37 }
 0x10f   :  { %v71_v54 = vsel %vm70_vm5, %v50_v35, %v69_v52 }
 0x110   :  { %v74_v56 = vsel %vm72_vm6, %v73_v53, %v71_v54 }
 0x111   :  { %v138_v55 = vpop.eup %137  ;;  %v82_v58 = vadd.f32 1e-06, %v74_v56 }
 0x112   :  { %v84_v57 = vmul.f32 %v138_v55, %v81_v49  ;;  %vm89_vm7 = vweird.f32 %v138_v55 }
 0x113   :  { %139 = vrcp.f32 %v82_v58  ;;  %vm90_vm9 = vmor %vm88_vm8, %vm89_vm7  ;;  %v109_v9 = vand.u32 2147483648, %v82_v58  ;;  %v107_v11 = vand.u32 2147483647, %v82_v58  ;;  %vm103_vm12 = vweird.f32 %v82_v58 }
 0x114   :  { %v85_v59 = vsub.f32 1.0, %v84_v57 }
 0x115   :  { %v110_v13 = vor.u32 1.1754944e-38, %v109_v9  ;;  %vm108_vm14 = vcmp.eq.f32.partialorder %v107_v11, 8.507059e+37 }
 0x116   :  { %v86_v61 = vmul.f32 %v138_v55, %v85_v59 }
 0x118   :  { %v87_v63 = vadd.f32 %v138_v55, %v86_v61 }
 0x119   :  { %v140_v1 = vpop.eup %139 }
 0x11a   :  { %v91_v3 = vsel %vm90_vm9, %v138_v55, %v87_v63  ;;  %v99_v5 = vmul.f32 %v140_v1, %v82_v58  ;;  %vm104_vm11 = vweird.f32 %v140_v1 }
 0x11b   :  { %v96_v4 = vsel %vm93_vm10, %v95_v0, %v91_v3  ;;  %vm105_vm13 = vmor %vm103_vm12, %vm104_vm11 }
 0x11c   :  { %v97_v6 = vmul.f32 %v96_v4, %v174_v15  ;;  %v100_v7 = vsub.f32 1.0, %v99_v5 }
 0x11e   :  { %v117_v8 = vadd.f32 %v128_v2, %v97_v6  ;;  %v101_v10 = vmul.f32 %v140_v1, %v100_v7 }
 0x120   :  { %119 = vst.msk [vmem:[%s196_s3] sm:$0xff] %vm16_vm0, %v117_v8  ;;  %v102_v12 = vadd.f32 %v140_v1, %v101_v10 }
 0x122   :  { %v106_v14 = vsel %vm105_vm13, %v140_v1, %v102_v12 }
 0x123   :  { %v111_v16 = vsel %vm108_vm14, %v110_v13, %v106_v14 }
 0x124   :  { %v112_v15 = vmul.f32 %v111_v16, %v177_v21 }
 0x126   :  { %v118_v17 = vadd.f32 %v128_v2, %v112_v15 }
 0x128   :  { %120 = vst.msk [vmem:[%s196_s3 + $0x8] sm:$0xff] %vm16_vm0, %v118_v17 }

// kernel: encoder_block_forward.17
= control target key start
LH: loop header
LB: loop body
LE: loop exit
PB: predicated region body
PF: predicated region fallthrough
CT: control target
= control target key end

     0   :  { %vm27_vm0 = vcmask 64512   ;;  %s207_s1 = inlined_call_operand.vmem [shape: f32[8,8], index: 1, kind: input, shape index: {}]   ;;  %s208_s0 = inlined_call_operand.vmem [shape: f32[64,8], index: 0, kind: input, shape index: {}]   ;;  %s209_s2 = inlined_call_operand.vmem [shape: f32[1,8], index: 2, kind: input, shape index: {}]   ;;  %s210_s3 = inlined_call_operand.vmem [shape: f32[64,8], index: 3, kind: output, shape index: {}]  }
   0x1   :  { %v22_v0 = vld [vmem:[%s207_s1] sm:$0xff]  ;;  %v20_v2 = vld [vmem:[%s208_s0 + $0x30] sm:$0xff]  ;;  %v19_v5 = vld [vmem:[%s208_s0 + $0x28] sm:$0xff] }
   0x2   :  { %v18_v1 = vld [vmem:[%s208_s0 + $0x20] sm:$0xff]  ;;  %114 = vmatpush.msra.mxu2 %v22_v0  ;;  %115 = vmatpush.msra.mxu3 %v22_v0  ;;  %v16_v4 = vld [vmem:[%s208_s0 + $0x10] sm:$0xff]  ;;  %v21_v6 = vld [vmem:[%s208_s0 + $0x38] sm:$0xff] }
   0x3   :  { %v14_v3 = vld [vmem:[%s208_s0] sm:$0xff]  ;;  %109 = vmatmul.msk.f32.vlgmr.msra.gmra.mxu2 %vm27_vm0, %v18_v1  ;;  %111 = vmatmul.msk.f32.vlgmr.msra.gmra.mxu3 %vm27_vm0, %v20_v2  ;;  %v15_v7 = vld [vmem:[%s208_s0 + $0x8] sm:$0xff]  ;;  %v17_v8 = vld [vmem:[%s208_s0 + $0x18] sm:$0xff] }
   0x4   :  { %67 = vmatpush.msra.mxu0 %v22_v0  ;;  %113 = vmatpush.msra.mxu1 %v22_v0  ;;  %v116_v9 = vld [vmem:[%s209_s2] ss:$0 sm:$0xff] }
   0x5   :  { %105 = vmatmul.msk.f32.vlgmr.msra.gmra.mxu0 %vm27_vm0, %v14_v3  ;;  %107 = vmatmul.msk.f32.vlgmr.msra.gmra.mxu1 %vm27_vm0, %v16_v4 }
   0xb   :  { %110 = vmatmul.msk.f32.gmra.mxu2 %vm27_vm0, %v19_v5  ;;  %112 = vmatmul.msk.f32.gmra.mxu3 %vm27_vm0, %v21_v6 }
   0xd   :  { %106 = vmatmul.msk.f32.gmra.mxu0 %vm27_vm0, %v15_v7  ;;  %108 = vmatmul.msk.f32.gmra.mxu1 %vm27_vm0, %v17_v8 }
  0x82   :  { %v69_v10 = vpop.f32.mrf.mxu0  ;;  %v75_v11 = vpop.f32.mrf.mxu1 }
  0x83   :  { %v70_v12 = vadd.f32 %v116_v9, %v69_v10  ;;  %v76_v13 = vadd.f32 %v116_v9, %v75_v11 }
  0x85   :  { %93 = vst.msk [vmem:[%s210_s3] sm:$0xff] %vm27_vm0, %v70_v12 }
  0x86   :  { %95 = vst.msk [vmem:[%s210_s3 + $0x10] sm:$0xff] %vm27_vm0, %v76_v13  ;;  %v81_v14 = vpop.f32.mrf.mxu2  ;;  %v87_v15 = vpop.f32.mrf.mxu3 }
  0x87   :  { %v82_v16 = vadd.f32 %v116_v9, %v81_v14  ;;  %v88_v17 = vadd.f32 %v116_v9, %v87_v15 }
  0x89   :  { %97 = vst.msk [vmem:[%s210_s3 + $0x20] sm:$0xff] %vm27_vm0, %v82_v16 }
  0x8a   :  { %99 = vst.msk [vmem:[%s210_s3 + $0x30] sm:$0xff] %vm27_vm0, %v88_v17  ;;  %v72_v18 = vpop.f32.mrf.mxu0  ;;  %v78_v19 = vpop.f32.mrf.mxu1 }
  0x8b   :  { %v73_v20 = vadd.f32 %v116_v9, %v72_v18  ;;  %v79_v21 = vadd.f32 %v116_v9, %v78_v19 }
  0x8d   :  { %94 = vst.msk [vmem:[%s210_s3 + $0x8] sm:$0xff] %vm27_vm0, %v73_v20 }
  0x8e   :  { %96 = vst.msk [vmem:[%s210_s3 + $0x18] sm:$0xff] %vm27_vm0, %v79_v21  ;;  %v84_v22 = vpop.f32.mrf.mxu2  ;;  %v90_v23 = vpop.f32.mrf.mxu3 }
  0x8f   :  { %v85_v24 = vadd.f32 %v116_v9, %v84_v22  ;;  %v91_v25 = vadd.f32 %v116_v9, %v90_v23 }
  0x91   :  { %98 = vst.msk [vmem:[%s210_s3 + $0x28] sm:$0xff] %vm27_vm0, %v85_v24 }
  0x92   :  { %100 = vst.msk [vmem:[%s210_s3 + $0x38] sm:$0xff] %vm27_vm0, %v91_v25 }

// kernel: encoder_block_forward.19
= control target key start
LH: loop header
LB: loop body
LE: loop exit
PB: predicated region body
PF: predicated region fallthrough
CT: control target
= control target key end

     0   :  { %s646_s15 = smov 0   ;;  %s648_s16 = smov 0   ;;  %s717_s0 = inlined_call_operand.vmem [shape: f32[2,4,8,8], index: 0, kind: input, shape index: {}]   ;;  %s718_s1 = inlined_call_operand.vmem [shape: f32[2,4,8,8], index: 1, kind: input, shape index: {}]   ;;  %s719_s2 = inlined_call_operand.vmem [shape: f32[2,4,8,8], index: 2, kind: input, shape index: {}]   ;;  %s720_s3 = inlined_call_operand.vmem [shape: f32[4,8,8], index: 3, kind: input, shape index: {}]   ;;  %s721_s4 = inlined_call_operand.vmem [shape: f32[2,4,8,8], index: 4, kind: output, shape index: {}]  }
   0x1   :  { %s650_s17 = smov 0   ;;  %s652_s18 = smov 0  }
   0x2   :  { %s654_s19 = smov 0  }
   0x3 LB: > { %s23_s20 = sadd.s32 1, %s611_s17  ;;  %s26_s21 = sadd.s32 1, %s615_s18  ;;  %s619_s19 = sphi %s654_s19, %s14_s19   ;;  %s615_s18 = sphi %s652_s18, %s725_s18   ;;  %s611_s17 = sphi %s650_s17, %s724_s17   ;;  %s607_s16 = sphi %s648_s16, %s723_s16   ;;  %s603_s15 = sphi %s646_s15, %s722_s15  }
   0x4   : > { %p24_p0 = scmp.ge.s32.totalorder %s23_s20, 4  ;;  %p523_p1 = scmp.ge.s32.totalorder %s619_s19, 1 }
   0x5   : > { %p220_p2 = scmp.lt.s32.totalorder %s619_s19, 9 }
   0x6   : > { %s727_s20 = smov (%p24_p0, %s23_s20), 0  ;;  %s729_s21 = smov (!%p24_p0, %s26_s21), %s615_s18 }
   0x7   : > { %p221_p3 = pnand %p523_p1, %p220_p2  ;;  %p28_p4 = scmp.ge.s32.totalorder %s729_s21, 2 }
   0x8   : > { %p272_p5 = scmp.lt.s32.totalorder (!%p221_p3), %s607_s16, 1  ;;  %p274_p6 = scmp.lt.s32.totalorder (!%p221_p3), %s603_s15, 3 }
   0x9   : > { %s731_s21 = smov (%p28_p4, %s729_s21), 0  ;;  %224 = sbr.rel (%p221_p3) target bundleno = 540 (0x21c), region = 36 }
   0xe   : > { %s733_s16 = smov (!%p272_p5, %s607_s16), 1  ;;  %s735_s15 = smov (!%p274_p6, %s603_s15), 3  ;;  %vm312_vm0 = vcmask 64512  }
   0xf   : > { %s524_s22 = sshll.u32 %s733_s16, 2  ;;  %s530_s5 = sshll.u32 %s735_s15, 3 }
  0x10   : > { %s277_s23 = sadd.s32 %s524_s22, %s735_s15  ;;  %s299_s8 = scalar_lea.vmem %s720_s3, %s530_s5 }
  0x11   : > { %s676_s24 = sshll.u32 %s277_s23, 3  ;;  %v311_v2 = vld [vmem:[%s299_s8] sm:$0xff] }
  0x12   : > { %s287_s27 = scalar_lea.vmem %s718_s1, %s676_s24  ;;  %s279_s30 = scalar_lea.vmem %s717_s0, %s676_s24 }
  0x13   : > { %v309_v0 = vld [vmem:[%s287_s27] sm:$0xff]  ;;  %s295_s11 = scalar_lea.vmem %s719_s2, %s676_s24  ;;  %s307_s14 = scalar_lea.vmem %s721_s4, %s676_s24 }
  0x14   : > { %v308_v1 = vld [vmem:[%s279_s30] sm:$0xff]  ;;  %331 = vmatpush.msra.mxu0 %v309_v0 }
  0x15   : > { %533 = vmatmul.msk.f32.vlgmr.msra.gmra.mxu0 %vm312_vm0, %v308_v1  ;;  %v310_v11 = vld [vmem:[%s295_s11] sm:$0xff] }
  0x16   : > { %379 = vmatpush.msra.mxu1 %v310_v11 }
  0x92   : > { %v333_v3 = vpop.f32.mrf.mxu0 }
  0x93   : > { %v336_v4 = vmul.f32 %v333_v3, %v311_v2 }
  0x95   : > { %v337_v5 = vsel %vm312_vm0, %v336_v4, -inf }
  0x96   : > { %338 = vmax.xlane.f32.xlu0 %v337_v5 }
 0x109   : > { %v339_v6 = vpop.xlane.xlu0 %338 }
 0x10a   : > { %v340_v7 = vsub.f32 %v336_v4, %v339_v6 }
 0x10c   : > { %v341_v8 = vmul.f32 1.442695, %v340_v7 }
 0x10e   : > { %577 = vpow2.f32 %v341_v8 }
 0x114   : > { %v578_v9 = vpop.eup %577 }
 0x115   : > { %v343_v10 = vsel %vm312_vm0, %v578_v9, 0.0 }
 0x116   : > { %344 = vadd.xlane.f32.xlu0 %v343_v10 }
 0x189   : > { %v345_v12 = vpop.xlane.xlu0 %344 }
 0x18a   : > { %579 = vrcp.f32 %v345_v12  ;;  %v357_v16 = vand.u32 2147483648, %v345_v12  ;;  %v355_v18 = vand.u32 2147483647, %v345_v12  ;;  %vm351_vm2 = vweird.f32 %v345_v12 }
 0x18c   : > { %v358_v20 = vor.u32 1.1754944e-38, %v357_v16  ;;  %vm356_vm4 = vcmp.eq.f32.partialorder %v355_v18, 8.507059e+37 }
 0x190   : > { %v580_v13 = vpop.eup %579 }
 0x191   : > { %v347_v14 = vmul.f32 %v580_v13, %v345_v12  ;;  %vm352_vm1 = vweird.f32 %v580_v13 }
 0x192   : > { %vm353_vm3 = vmor %vm351_vm2, %vm352_vm1 }
 0x193   : > { %v348_v15 = vsub.f32 1.0, %v347_v14 }
 0x195   : > { %v349_v17 = vmul.f32 %v580_v13, %v348_v15 }
 0x197   : > { %v350_v19 = vadd.f32 %v580_v13, %v349_v17 }
 0x199   : > { %v354_v21 = vsel %vm353_vm3, %v580_v13, %v350_v19 }
 0x19a   : > { %v359_v22 = vsel %vm356_vm4, %v358_v20, %v354_v21 }
 0x19b   : > { %v360_v23 = vmul.f32 %v578_v9, %v359_v22 }
 0x19d   : > { %534 = vmatmul.msk.f32.vlgmr.msra.gmra.mxu1 %vm312_vm0, %v360_v23 }
 0x21a   : > { %v381_v24 = vpop.f32.mrf.mxu1 }
 0x21b   : > { %384 = vst.msk [vmem:[%s307_s14] sm:$0xff] %vm312_vm0, %v381_v24 }
 0x21c PF: > { %s14_s19 = sadd.s32 1, %s619_s19   ;;  %s722_s15 = smov %s611_s17 }
 0x21d   : > { %p11_p7 = scmp.ge.s32.totalorder %s14_s19, 10   ;;  %s723_s16 = smov %s615_s18 }
 0x21e   : > { %s724_s17 = smov %s727_s20  ;;  %s725_s18 = smov %s731_s21 }
 0x21f   :  { %13 = sbr.rel (!%p11_p7) target bundleno = 3 (0x3), region = 75 }

// kernel: encoder_block_forward.24
= control target key start
LH: loop header
LB: loop body
LE: loop exit
PB: predicated region body
PF: predicated region fallthrough
CT: control target
= control target key end

     0   :  { %vm24_vm0 = vcmask 261120   ;;  %vm56_vm1 = vcmask 523264   ;;  %s117_s1 = inlined_call_operand.vmem [shape: f32[32,64], index: 1, kind: input, shape index: {}]   ;;  %s118_s2 = inlined_call_operand.vmem [shape: f32[1,64], index: 2, kind: input, shape index: {}]   ;;  %s119_s0 = inlined_call_operand.vmem [shape: f32[16,32], index: 0, kind: input, shape index: {}]   ;;  %s120_s3 = inlined_call_operand.vmem [shape: f32[16,64], index: 3, kind: output, shape index: {}]  }
   0x1   :  { %v19_v0 = vld [vmem:[%s117_s1 + $0x18] sm:$0xff]  ;;  %v18_v1 = vld [vmem:[%s117_s1 + $0x10] sm:$0xff]  ;;  %v17_v2 = vld [vmem:[%s117_s1 + $0x8] sm:$0xff] }
   0x2   :  { %43 = vmatpush.msra.mxu0 %v19_v0  ;;  %65 = vmatpush.msra.mxu1 %v19_v0  ;;  %v16_v3 = vld [vmem:[%s117_s1] sm:$0xff]  ;;  %v15_v5 = vld [vmem:[%s119_s0 + $0x8] sm:$0xff] }
   0x3   :  { %v14_v4 = vld [vmem:[%s119_s0] sm:$0xff] }
   0x4   :  { %44 = vmatpush.msra.mxu0 %v18_v1  ;;  %66 = vmatpush.msra.mxu1 %v18_v1  ;;  %v69_v6 = vld [vmem:[%s118_s2] ss:$0 sm:$0xff] }
   0x6   :  { %45 = vmatpush.msra.mxu0 %v17_v2  ;;  %67 = vmatpush.msra.mxu1 %v17_v2 }
   0x8   :  { %46 = vmatpush.msra.mxu0 %v16_v3  ;;  %68 = vmatpush.msra.mxu1 %v16_v3 }
   0x9   :  { %63 = vmatmul.msk.f32.vlgmr.msra.gmra.mxu0 %vm24_vm0, %v14_v4  ;;  %64 = vmatmul.msk.f32.vlgmr.msra.gmra.mxu1 %vm24_vm0, %v15_v5 }
  0x86   :  { %v48_v7 = vpop.f32.mrf.mxu0  ;;  %v51_v8 = vpop.f32.mrf.mxu1 }
  0x87   :  { %v49_v9 = vadd.f32 %v69_v6, %v48_v7  ;;  %v52_v10 = vadd.f32 %v69_v6, %v51_v8 }
  0x89   :  { %v54_v11 = vmax.f32 %v49_v9, 0.0  ;;  %v55_v12 = vmax.f32 %v52_v10, 0.0 }
  0x8b   :  { %57 = vst.msk [vmem:[%s120_s3] sm:$0xff] %vm56_vm1, %v54_v11 }
  0x8c   :  { %58 = vst.msk [vmem:[%s120_s3 + $0x8] sm:$0xff] %vm56_vm1, %v55_v12 }

// kernel: encoder_block_forward.22
= control target key start
LH: loop header
LB: loop body
LE: loop exit
PB: predicated region body
PF: predicated region fallthrough
CT: control target
= control target key end

     0   :  { %vm67_vm8 = vcmask 261120   ;;  %s186_s3 = inlined_call_operand.vmem [shape: f32[32,32], index: 3, kind: input, shape index: {}]   ;;  %s187_s0 = inlined_call_operand.vmem [shape: f32[16,32], index: 0, kind: input, shape index: {}]   ;;  %s188_s1 = inlined_call_operand.vmem [shape: f32[16,32], index: 1, kind: input, shape index: {}]   ;;  %s189_s2 = inlined_call_operand.vmem [shape: f32[16,32], index: 2, kind: input, shape index: {}, may-alias: {2,4}]   ;;  %s190_s4 = inlined_call_operand.vmem [shape: f32[16,32], index: 4, kind: output, shape index: {}, may-alias: {2,4}]  }
   0x1   :  { %v66_v0 = vld [vmem:[%s186_s3 + $0x18] sm:$0xff]  ;;  %v65_v1 = vld [vmem:[%s186_s3 + $0x10] sm:$0xff]  ;;  %v17_v2 = vld [vmem:[%s187_s0] sm:$0xff] }
   0x2   :  { %86 = vmatpush.msra.mxu0 %v66_v0  ;;  %109 = vmatpush.msra.mxu1 %v66_v0  ;;  %v19_v3 = vld [vmem:[%s188_s1] sm:$0xff]  ;;  %v64_v4 = vld [vmem:[%s186_s3 + $0x8] sm:$0xff] }
   0x3   :  { %v21_v5 = vmul.f32 %v19_v3, %v17_v2  ;;  %v18_v6 = vld [vmem:[%s187_s0 + $0x8] sm:$0xff]  ;;  %v63_v9 = vld [vmem:[%s186_s3] sm:$0xff] }
   0x4   :  { %v20_v7 = vld [vmem:[%s188_s1 + $0x8] sm:$0xff]  ;;  %87 = vmatpush.msra.mxu0 %v65_v1  ;;  %110 = vmatpush.msra.mxu1 %v65_v1  ;;  %v97_v40 = vld [vmem:[%s189_s2] sm:$0xff] }
   0x5   :  { %v22_v8 = vmul.f32 %v20_v7, %v18_v6  ;;  %v23_v10 = vsub.f32 0.0, %v21_v5  ;;  %v98_v41 = vld [vmem:[%s189_s2 + $0x8] sm:$0xff] }
   0x6   :  { %88 = vmatpush.msra.mxu0 %v64_v4  ;;  %111 = vmatpush.msra.mxu1 %v64_v4 }
   0x7   :  { %v24_v11 = vsub.f32 0.0, %v22_v8  ;;  %v25_v12 = vmul.f32 1.442695, %v23_v10 }
   0x8   :  { %89 = vmatpush.msra.mxu0 %v63_v9  ;;  %112 = vmatpush.msra.mxu1 %v63_v9 }
   0x9   :  { %v27_v13 = vmul.f32 1.442695, %v24_v11  ;;  %113 = vpow2.f32 %v25_v12 }
   0xb   :  { %115 = vpow2.f32 %v27_v13 }
   0xf   :  { %v114_v14 = vpop.eup %113 }
  0x10   :  { %v29_v16 = vadd.f32 1.0, %v114_v14 }
  0x11   :  { %v116_v15 = vpop.eup %115 }
  0x12   :  { %v30_v17 = vadd.f32 1.0, %v116_v15  ;;  %117 = vrcp.f32 %v29_v16  ;;  %vm36_vm0 = vweird.f32 %v29_v16  ;;  %v42_v21 = vand.u32 2147483648, %v29_v16 }
  0x13   :  { %v40_v24 = vand.u32 2147483647, %v29_v16 }
  0x14   :  { %119 = vrcp.f32 %v30_v17  ;;  %v57_v25 = vand.u32 2147483648, %v30_v17  ;;  %vm51_vm2 = vweird.f32 %v30_v17  ;;  %v55_v27 = vand.u32 2147483647, %v30_v17 }
  0x15   :  { %v43_v29 = vor.u32 1.1754944e-38, %v42_v21  ;;  %vm41_vm5 = vcmp.eq.f32.partialorder %v40_v24, 8.507059e+37 }
  0x16   :  { %v58_v32 = vor.u32 1.1754944e-38, %v57_v25  ;;  %vm56_vm7 = vcmp.eq.f32.partialorder %v55_v27, 8.507059e+37 }
  0x18   :  { %v118_v18 = vpop.eup %117 }
  0x19   :  { %v32_v20 = vmul.f32 %v118_v18, %v29_v16  ;;  %vm37_vm1 = vweird.f32 %v118_v18 }
  0x1a   :  { %v120_v19 = vpop.eup %119  ;;  %vm38_vm4 = vmor %vm36_vm0, %vm37_vm1 }
  0x1b   :  { %v47_v22 = vmul.f32 %v120_v19, %v30_v17  ;;  %v33_v23 = vsub.f32 1.0, %v32_v20  ;;  %vm52_vm3 = vweird.f32 %v120_v19 }
  0x1c   :  { %vm53_vm6 = vmor %vm51_vm2, %vm52_vm3 }
  0x1d   :  { %v48_v26 = vsub.f32 1.0, %v47_v22  ;;  %v34_v28 = vmul.f32 %v118_v18, %v33_v23 }
  0x1f   :  { %v49_v30 = vmul.f32 %v120_v19, %v48_v26  ;;  %v35_v31 = vadd.f32 %v118_v18, %v34_v28 }
  0x21   :  { %v50_v33 = vadd.f32 %v120_v19, %v49_v30  ;;  %v39_v34 = vsel %vm38_vm4, %v118_v18, %v35_v31 }
  0x22   :  { %v44_v35 = vsel %vm41_vm5, %v43_v29, %v39_v34 }
  0x23   :  { %v54_v36 = vsel %vm53_vm6, %v120_v19, %v50_v33  ;;  %v61_v37 = vmul.f32 %v44_v35, %v21_v5 }
  0x24   :  { %v59_v38 = vsel %vm56_vm7, %v58_v32, %v54_v36 }
  0x25   :  { %v62_v39 = vmul.f32 %v59_v38, %v22_v8  ;;  %107 = vmatmul.msk.f32.vlgmr.msra.gmra.mxu0 %vm67_vm8, %v61_v37 }
  0x27   :  { %108 = vmatmul.msk.f32.vlgmr.msra.gmra.mxu1 %vm67_vm8, %v62_v39 }
  0xa2   :  { %v91_v42 = vpop.f32.mrf.mxu0 }
  0xa3   :  { %v99_v43 = vadd.f32 %v97_v40, %v91_v42 }
  0xa4   :  { %v94_v44 = vpop.f32.mrf.mxu1 }
  0xa5   :  { %v100_v45 = vadd.f32 %v98_v41, %v94_v44  ;;  %101 = vst.msk [vmem:[%s190_s4] sm:$0xff] %vm67_vm8, %v99_v43 }
  0xa7   :  { %102 = vst.msk [vmem:[%s190_s4 + $0x8] sm:$0xff] %vm67_vm8, %v100_v45 }

// kernel: encoder_block_forward.20
= control target key start
LH: loop header
LB: loop body
LE: loop exit
PB: predicated region body
PF: predicated region fallthrough
CT: control target
= control target key end

     0   :  { %vm30_vm0 = vcmask 64512   ;;  %vm233_vm1 = vcmask 1043456   ;;  %v530_v18 = vmov 2.0   ;;  %vm208_vm3 = vcmask 31744   ;;  %s747_s1 = inlined_call_operand.vmem [shape: f32[8,4], index: 1, kind: input, shape index: {}]   ;;  %s748_s0 = inlined_call_operand.vmem [shape: f32[64,8], index: 0, kind: input, shape index: {}]   ;;  %s749_s2 = inlined_call_operand.vmem [shape: f32[4,8], index: 2, kind: input, shape index: {}]   ;;  %s750_s3 = inlined_call_operand.vmem [shape: f32[1,8], index: 3, kind: input, shape index: {}]   ;;  %s751_s4 = inlined_call_operand.vmem [shape: f32[1,8], index: 4, kind: input, shape index: {}]   ;;  %s752_s5 = inlined_call_operand.vmem [shape: f32[64,8], index: 5, kind: output, shape index: {}]  }
   0x1   :  { %v28_v0 = vld [vmem:[%s747_s1] sm:$0xff]  ;;  %v577_v3 = vld [vmem:[%s748_s0 + $0x8] sm:$0xff]  ;;  %v587_v5 = vld [vmem:[%s748_s0 + $0x10] sm:$0xff]  ;;  %512 = vrcp.f32 %v530_v18 }
   0x2   :  { %v567_v1 = vld [vmem:[%s748_s0] sm:$0xff]  ;;  %70 = vmatpush.msra.mxu0 %v28_v0  ;;  %158 = vmatpush.msra.mxu1 %v28_v0  ;;  %v112_v4 = vmul.f32 %v577_v3, %v577_v3  ;;  %v113_v6 = vmul.f32 %v587_v5, %v587_v5  ;;  %v597_v7 = vld [vmem:[%s748_s0 + $0x18] sm:$0xff]  ;;  %v617_v11 = vld [vmem:[%s748_s0 + $0x28] sm:$0xff] }
   0x3   :  { %v111_v2 = vmul.f32 %v567_v1, %v567_v1  ;;  %475 = vmatmul.msk.f32.vlgmr.msra.gmra.mxu0 %vm30_vm0, %v567_v1  ;;  %v114_v8 = vmul.f32 %v597_v7, %v597_v7  ;;  %v607_v9 = vld [vmem:[%s748_s0 + $0x20] sm:$0xff]  ;;  %v116_v12 = vmul.f32 %v617_v11, %v617_v11  ;;  %v627_v13 = vld [vmem:[%s748_s0 + $0x30] sm:$0xff]  ;;  %v637_v15 = vld [vmem:[%s748_s0 + $0x38] sm:$0xff] }
   0x4   :  { %v115_v10 = vmul.f32 %v607_v9, %v607_v9  ;;  %v117_v14 = vmul.f32 %v627_v13, %v627_v13  ;;  %v118_v16 = vmul.f32 %v637_v15, %v637_v15  ;;  %v29_v17 = vld [vmem:[%s749_s2] sm:$0xf] }
   0x5   :  { %483 = vmatmul.msk.f32.vlgmr.msra.gmra.mxu1 %vm30_vm0, %v111_v2  ;;  %491 = vmatpush.msk.msra.mxu2 %vm233_vm1, %v29_v17 }
   0x6   :  { %500 = vmatpush.msk.msra.mxu3 %vm233_vm1, %v29_v17 }
   0x7   :  { %v513_v19 = vpop.eup %512 }
   0x8   :  { %v97_v20 = vmul.f32 2.0, %v513_v19  ;;  %vm101_vm2 = vweird.f32 %v513_v19 }
   0xa   :  { %v98_v21 = vsub.f32 1.0, %v97_v20 }
   0xb   :  { %476 = vmatmul.msk.f32.gmra.mxu0 %vm30_vm0, %v577_v3 }
   0xc   :  { %v99_v22 = vmul.f32 %v513_v19, %v98_v21 }
   0xd   :  { %484 = vmatmul.msk.f32.gmra.mxu1 %vm30_vm0, %v112_v4 }
   0xe   :  { %v100_v23 = vadd.f32 %v513_v19, %v99_v22 }
  0x10   :  { %v647_v24 = vsel %vm101_vm2, %v513_v19, %v100_v23 }
  0x13   :  { %477 = vmatmul.msk.f32.gmra.mxu0 %vm30_vm0, %v587_v5 }
  0x15   :  { %485 = vmatmul.msk.f32.gmra.mxu1 %vm30_vm0, %v113_v6 }
  0x1b   :  { %478 = vmatmul.msk.f32.gmra.mxu0 %vm30_vm0, %v597_v7 }
  0x1d   :  { %486 = vmatmul.msk.f32.gmra.mxu1 %vm30_vm0, %v114_v8 }
  0x23   :  { %479 = vmatmul.msk.f32.gmra.mxu0 %vm30_vm0, %v607_v9 }
  0x25   :  { %487 = vmatmul.msk.f32.gmra.mxu1 %vm30_vm0, %v115_v10 }
  0x2b   :  { %480 = vmatmul.msk.f32.gmra.mxu0 %vm30_vm0, %v617_v11 }
  0x2d   :  { %488 = vmatmul.msk.f32.gmra.mxu1 %vm30_vm0, %v116_v12 }
  0x33   :  { %481 = vmatmul.msk.f32.gmra.mxu0 %vm30_vm0, %v627_v13 }
  0x35   :  { %489 = vmatmul.msk.f32.gmra.mxu1 %vm30_vm0, %v117_v14 }
  0x3b   :  { %482 = vmatmul.msk.f32.gmra.mxu0 %vm30_vm0, %v637_v15 }
  0x3d   :  { %490 = vmatmul.msk.f32.gmra.mxu1 %vm30_vm0, %v118_v16 }
  0x80   :  { %v72_v25 = vpop.f32.mrf.mxu0 }
  0x81   :  { %v103_v26 = vmul.f32 %v647_v24, %v72_v25 }
  0x82   :  { %v160_v27 = vpop.f32.mrf.mxu1 }
  0x83   :  { %v184_v28 = vmul.f32 %v160_v27, %v647_v24  ;;  %v192_v29 = vmul.f32 %v103_v26, %v103_v26  ;;  %492 = vmatmul.msk.f32.vlgmr.msra.gmra.mxu2 %vm208_vm3, %v103_v26 }
  0x85   :  { %v200_v30 = vsub.f32 %v184_v28, %v192_v29 }
  0x87   :  { %501 = vmatmul.msk.f32.vlgmr.msra.gmra.mxu3 %vm208_vm3, %v200_v30 }
  0x88   :  { %v75_v31 = vpop.f32.mrf.mxu0 }
  0x89   :  { %v104_v32 = vmul.f32 %v647_v24, %v75_v31 }
  0x8a   :  { %v163_v33 = vpop.f32.mrf.mxu1 }
  0x8b   :  { %v185_v34 = vmul.f32 %v163_v33, %v647_v24  ;;  %v193_v35 = vmul.f32 %v104_v32, %v104_v32  ;;  %493 = vmatmul.msk.f32.gmra.mxu2 %vm208_vm3, %v104_v32 }
  0x8d   :  { %v201_v36 = vsub.f32 %v185_v34, %v193_v35  ;;  %v685_v34 = vld [vmem:[%s750_s3] ss:$0 sm:$0xff] }
  0x8f   :  { %502 = vmatmul.msk.f32.gmra.mxu3 %vm208_vm3, %v201_v36 }
  0x90   :  { %v78_v37 = vpop.f32.mrf.mxu0 }
  0x91   :  { %v105_v38 = vmul.f32 %v647_v24, %v78_v37 }
  0x92   :  { %v166_v39 = vpop.f32.mrf.mxu1 }
  0x93   :  { %v186_v40 = vmul.f32 %v166_v39, %v647_v24  ;;  %v194_v41 = vmul.f32 %v105_v38, %v105_v38  ;;  %494 = vmatmul.msk.f32.gmra.mxu2 %vm208_vm3, %v105_v38  ;;  %v690_v38 = vld [vmem:[%s751_s4] ss:$0 sm:$0xff] }
  0x95   :  { %v202_v42 = vsub.f32 %v186_v40, %v194_v41 }
  0x97   :  { %503 = vmatmul.msk.f32.gmra.mxu3 %vm208_vm3, %v202_v42 }
  0x98   :  { %v81_v43 = vpop.f32.mrf.mxu0 }
  0x99   :  { %v106_v44 = vmul.f32 %v647_v24, %v81_v43 }
  0x9a   :  { %v169_v45 = vpop.f32.mrf.mxu1 }
  0x9b   :  { %v187_v46 = vmul.f32 %v169_v45, %v647_v24  ;;  %v195_v47 = vmul.f32 %v106_v44, %v106_v44  ;;  %495 = vmatmul.msk.f32.gmra.mxu2 %vm208_vm3, %v106_v44 }
  0x9d   :  { %v203_v48 = vsub.f32 %v187_v46, %v195_v47 }
  0x9f   :  { %504 = vmatmul.msk.f32.gmra.mxu3 %vm208_vm3, %v203_v48 }
  0xa0   :  { %v84_v49 = vpop.f32.mrf.mxu0 }
  0xa1   :  { %v107_v50 = vmul.f32 %v647_v24, %v84_v49 }
  0xa2   :  { %v172_v51 = vpop.f32.mrf.mxu1 }
  0xa3   :  { %v188_v52 = vmul.f32 %v172_v51, %v647_v24  ;;  %v196_v53 = vmul.f32 %v107_v50, %v107_v50  ;;  %496 = vmatmul.msk.f32.gmra.mxu2 %vm208_vm3, %v107_v50 }
  0xa5   :  { %v204_v54 = vsub.f32 %v188_v52, %v196_v53 }
  0xa7   :  { %505 = vmatmul.msk.f32.gmra.mxu3 %vm208_vm3, %v204_v54 }
  0xa8   :  { %v87_v55 = vpop.f32.mrf.mxu0 }
  0xa9   :  { %v108_v56 = vmul.f32 %v647_v24, %v87_v55 }
  0xaa   :  { %v175_v57 = vpop.f32.mrf.mxu1 }
  0xab   :  { %v189_v58 = vmul.f32 %v175_v57, %v647_v24  ;;  %v197_v59 = vmul.f32 %v108_v56, %v108_v56  ;;  %497 = vmatmul.msk.f32.gmra.mxu2 %vm208_vm3, %v108_v56 }
  0xad   :  { %v205_v60 = vsub.f32 %v189_v58, %v197_v59 }
  0xaf   :  { %506 = vmatmul.msk.f32.gmra.mxu3 %vm208_vm3, %v205_v60 }
  0xb0   :  { %v90_v61 = vpop.f32.mrf.mxu0 }
  0xb1   :  { %v109_v62 = vmul.f32 %v647_v24, %v90_v61 }
  0xb2   :  { %v178_v63 = vpop.f32.mrf.mxu1 }
  0xb3   :  { %v190_v0 = vmul.f32 %v178_v63, %v647_v24  ;;  %v198_v2 = vmul.f32 %v109_v62, %v109_v62  ;;  %498 = vmatmul.msk.f32.gmra.mxu2 %vm208_vm3, %v109_v62 }
  0xb5   :  { %v206_v4 = vsub.f32 %v190_v0, %v198_v2 }
  0xb7   :  { %507 = vmatmul.msk.f32.gmra.mxu3 %vm208_vm3, %v206_v4 }
  0xb8   :  { %v93_v6 = vpop.f32.mrf.mxu0 }
  0xb9   :  { %v110_v8 = vmul.f32 %v647_v24, %v93_v6 }
  0xba   :  { %v181_v10 = vpop.f32.mrf.mxu1 }
  0xbb   :  { %v191_v12 = vmul.f32 %v181_v10, %v647_v24  ;;  %v199_v14 = vmul.f32 %v110_v8, %v110_v8  ;;  %499 = vmatmul.msk.f32.gmra.mxu2 %vm208_vm3, %v110_v8 }
  0xbd   :  { %v207_v16 = vsub.f32 %v191_v12, %v199_v14 }
  0xbf   :  { %508 = vmatmul.msk.f32.gmra.mxu3 %vm208_vm3, %v207_v16 }
 0x106   :  { %v254_v19 = vpop.f32.mrf.mxu2 }
 0x107   :  { %v278_v33 = vsub.f32 %v567_v1, %v254_v19 }
 0x10a   :  { %v327_v17 = vpop.f32.mrf.mxu3 }
 0x10b   :  { %v328_v18 = vadd.f32 1e-05, %v327_v17 }
 0x10d   :  { %514 = vrsqrt.f32 %v328_v18  ;;  %vm357_vm5 = vweird.f32 %v328_v18 }
 0x10e   :  { %v257_v26 = vpop.f32.mrf.mxu2 }
 0x10f   :  { %v279_v48 = vsub.f32 %v577_v3, %v257_v26 }
 0x112   :  { %v330_v20 = vpop.f32.mrf.mxu3 }
 0x113   :  { %v515_v21 = vpop.eup %514  ;;  %v331_v22 = vadd.f32 1e-05, %v330_v20 }
 0x114   :  { %v352_v23 = vmul.f32 %v515_v21, %v328_v18  ;;  %vm358_vm4 = vweird.f32 %v515_v21 }
 0x115   :  { %516 = vrsqrt.f32 %v331_v22  ;;  %vm359_vm6 = vmor %vm357_vm5, %vm358_vm4  ;;  %vm367_vm8 = vweird.f32 %v331_v22 }
 0x116   :  { %v353_v25 = vmul.f32 %v515_v21, %v352_v23  ;;  %v260_v40 = vpop.f32.mrf.mxu2 }
 0x117   :  { %v280_v3 = vsub.f32 %v587_v5, %v260_v40 }
 0x118   :  { %v354_v27 = vmul.f32 0.5, %v353_v25 }
 0x11a   :  { %v355_v28 = vsub.f32 1.5, %v354_v27  ;;  %v333_v24 = vpop.f32.mrf.mxu3 }
 0x11b   :  { %v517_v29 = vpop.eup %516  ;;  %v334_v30 = vadd.f32 1e-05, %v333_v24 }
 0x11c   :  { %v356_v31 = vmul.f32 %v515_v21, %v355_v28  ;;  %v362_v32 = vmul.f32 %v517_v29, %v331_v22  ;;  %vm368_vm7 = vweird.f32 %v517_v29 }
 0x11d   :  { %518 = vrsqrt.f32 %v334_v30  ;;  %vm369_vm9 = vmor %vm367_vm8, %vm368_vm7  ;;  %vm377_vm11 = vweird.f32 %v334_v30 }
 0x11e   :  { %v360_v35 = vsel %vm359_vm6, %v515_v21, %v356_v31  ;;  %v363_v36 = vmul.f32 %v517_v29, %v362_v32  ;;  %v263_v55 = vpop.f32.mrf.mxu2 }
 0x11f   :  { %v431_v37 = vmul.f32 %v360_v35, %v278_v33  ;;  %v281_v5 = vsub.f32 %v597_v7, %v263_v55 }
 0x120   :  { %v364_v39 = vmul.f32 0.5, %v363_v36 }
 0x121   :  { %v443_v41 = vmul.f32 %v685_v34, %v431_v37 }
 0x122   :  { %v365_v1 = vsub.f32 1.5, %v364_v39  ;;  %v336_v42 = vpop.f32.mrf.mxu3 }
 0x123   :  { %v519_v43 = vpop.eup %518  ;;  %v455_v44 = vadd.f32 %v690_v38, %v443_v41  ;;  %v337_v45 = vadd.f32 1e-05, %v336_v42 }
 0x124   :  { %v366_v46 = vmul.f32 %v517_v29, %v365_v1  ;;  %v372_v47 = vmul.f32 %v519_v43, %v334_v30  ;;  %vm378_vm10 = vweird.f32 %v519_v43 }
 0x125   :  { %463 = vst.msk [vmem:[%s752_s5] sm:$0xff] %vm30_vm0, %v455_v44  ;;  %520 = vrsqrt.f32 %v337_v45  ;;  %vm379_vm12 = vmor %vm377_vm11, %vm378_vm10  ;;  %vm387_vm14 = vweird.f32 %v337_v45 }
 0x126   :  { %v370_v49 = vsel %vm369_vm9, %v517_v29, %v366_v46  ;;  %v373_v50 = vmul.f32 %v519_v43, %v372_v47  ;;  %v266_v17 = vpop.f32.mrf.mxu2 }
 0x127   :  { %v432_v51 = vmul.f32 %v370_v49, %v279_v48  ;;  %v282_v7 = vsub.f32 %v607_v9, %v266_v17 }
 0x128   :  { %v374_v52 = vmul.f32 0.5, %v373_v50 }
 0x129   :  { %v444_v53 = vmul.f32 %v685_v34, %v432_v51 }
 0x12a   :  { %v375_v54 = vsub.f32 1.5, %v374_v52  ;;  %v339_v56 = vpop.f32.mrf.mxu3 }
 0x12b   :  { %v521_v57 = vpop.eup %520  ;;  %v456_v58 = vadd.f32 %v690_v38, %v444_v53  ;;  %v340_v59 = vadd.f32 1e-05, %v339_v56 }
 0x12c   :  { %v376_v60 = vmul.f32 %v519_v43, %v375_v54  ;;  %v382_v61 = vmul.f32 %v521_v57, %v337_v45  ;;  %vm388_vm13 = vweird.f32 %v521_v57 }
 0x12d   :  { %464 = vst.msk [vmem:[%s752_s5 + $0x8] sm:$0xff] %vm30_vm0, %v456_v58  ;;  %522 = vrsqrt.f32 %v340_v59  ;;  %vm389_vm15 = vmor %vm387_vm14, %vm388_vm13  ;;  %vm397_vm2 = vweird.f32 %v340_v59 }
 0x12e   :  { %v380_v62 = vsel %vm379_vm12, %v519_v43, %v376_v60  ;;  %v383_v63 = vmul.f32 %v521_v57, %v382_v61  ;;  %v269_v32 = vpop.f32.mrf.mxu2 }
 0x12f   :  { %v433_v0 = vmul.f32 %v380_v62, %v280_v3  ;;  %v283_v9 = vsub.f32 %v617_v11, %v269_v32 }
 0x130   :  { %v384_v2 = vmul.f32 0.5, %v383_v63 }
 0x131   :  { %v445_v4 = vmul.f32 %v685_v34, %v433_v0 }
 0x132   :  { %v385_v6 = vsub.f32 1.5, %v384_v2  ;;  %v342_v8 = vpop.f32.mrf.mxu3 }
 0x133   :  { %v523_v10 = vpop.eup %522  ;;  %v457_v12 = vadd.f32 %v690_v38, %v445_v4  ;;  %v343_v14 = vadd.f32 1e-05, %v342_v8 }
 0x134   :  { %v386_v16 = vmul.f32 %v521_v57, %v385_v6  ;;  %v392_v18 = vmul.f32 %v523_v10, %v340_v59  ;;  %vm398_vm1 = vweird.f32 %v523_v10 }
 0x135   :  { %465 = vst.msk [vmem:[%s752_s5 + $0x10] sm:$0xff] %vm30_vm0, %v457_v12  ;;  %524 = vrsqrt.f32 %v343_v14  ;;  %vm399_vm3 = vmor %vm397_vm2, %vm398_vm1  ;;  %vm407_vm5 = vweird.f32 %v343_v14 }
 0x136   :  { %v390_v19 = vsel %vm389_vm15, %v521_v57, %v386_v16  ;;  %v393_v20 = vmul.f32 %v523_v10, %v392_v18  ;;  %v272_v48 = vpop.f32.mrf.mxu2 }
 0x137   :  { %v434_v21 = vmul.f32 %v390_v19, %v281_v5  ;;  %v284_v11 = vsub.f32 %v627_v13, %v272_v48 }
 0x138   :  { %v394_v22 = vmul.f32 0.5, %v393_v20 }
 0x139   :  { %v446_v23 = vmul.f32 %v685_v34, %v434_v21 }
 0x13a   :  { %v395_v25 = vsub.f32 1.5, %v394_v22  ;;  %v345_v26 = vpop.f32.mrf.mxu3 }
 0x13b   :  { %v525_v27 = vpop.eup %524  ;;  %v458_v28 = vadd.f32 %v690_v38, %v446_v23  ;;  %v346_v24 = vadd.f32 1e-05, %v345_v26 }
 0x13c   :  { %v396_v29 = vmul.f32 %v523_v10, %v395_v25  ;;  %v402_v30 = vmul.f32 %v525_v27, %v343_v14  ;;  %vm408_vm4 = vweird.f32 %v525_v27 }
 0x13d   :  { %466 = vst.msk [vmem:[%s752_s5 + $0x18] sm:$0xff] %vm30_vm0, %v458_v28  ;;  %526 = vrsqrt.f32 %v346_v24  ;;  %vm409_vm6 = vmor %vm407_vm5, %vm408_vm4  ;;  %vm417_vm8 = vweird.f32 %v346_v24 }
 0x13e   :  { %v400_v31 = vsel %vm399_vm3, %v523_v10, %v396_v29  ;;  %v403_v33 = vmul.f32 %v525_v27, %v402_v30  ;;  %v275_v61 = vpop.f32.mrf.mxu2 }
 0x13f   :  { %v435_v35 = vmul.f32 %v400_v31, %v282_v7  ;;  %v285_v13 = vsub.f32 %v637_v15, %v275_v61 }
 0x140   :  { %v404_v36 = vmul.f32 0.5, %v403_v33 }
 0x141   :  { %v447_v37 = vmul.f32 %v685_v34, %v435_v35 }
 0x142   :  { %v405_v39 = vsub.f32 1.5, %v404_v36  ;;  %v348_v40 = vpop.f32.mrf.mxu3 }
 0x143   :  { %v527_v41 = vpop.eup %526  ;;  %v459_v1 = vadd.f32 %v690_v38, %v447_v37  ;;  %v349_v42 = vadd.f32 1e-05, %v348_v40 }
 0x144   :  { %v406_v43 = vmul.f32 %v525_v27, %v405_v39  ;;  %v412_v44 = vmul.f32 %v527_v41, %v346_v24  ;;  %vm418_vm7 = vweird.f32 %v527_v41 }
 0x145   :  { %467 = vst.msk [vmem:[%s752_s5 + $0x20] sm:$0xff] %vm30_vm0, %v459_v1  ;;  %528 = vrsqrt.f32 %v349_v42  ;;  %vm419_vm9 = vmor %vm417_vm8, %vm418_vm7  ;;  %vm427_vm11 = vweird.f32 %v349_v42 }
 0x146   :  { %v410_v45 = vsel %vm409_vm6, %v525_v27, %v406_v43  ;;  %v413_v46 = vmul.f32 %v527_v41, %v412_v44 }
 0x147   :  { %v436_v47 = vmul.f32 %v410_v45, %v283_v9 }
 0x148   :  { %v414_v49 = vmul.f32 0.5, %v413_v46 }
 0x149   :  { %v448_v50 = vmul.f32 %v685_v34, %v436_v47 }
 0x14a   :  { %v415_v51 = vsub.f32 1.5, %v414_v49 }
 0x14b   :  { %v529_v52 = vpop.eup %528  ;;  %v460_v53 = vadd.f32 %v690_v38, %v448_v50 }
 0x14c   :  { %v416_v54 = vmul.f32 %v527_v41, %v415_v51  ;;  %v422_v55 = vmul.f32 %v529_v52, %v349_v42  ;;  %vm428_vm10 = vweird.f32 %v529_v52 }
 0x14d   :  { %468 = vst.msk [vmem:[%s752_s5 + $0x28] sm:$0xff] %vm30_vm0, %v460_v53  ;;  %vm429_vm12 = vmor %vm427_vm11, %vm428_vm10 }
 0x14e   :  { %v420_v56 = vsel %vm419_vm9, %v527_v41, %v416_v54  ;;  %v423_v57 = vmul.f32 %v529_v52, %v422_v55 }
 0x14f   :  { %v437_v58 = vmul.f32 %v420_v56, %v284_v11 }
 0x150   :  { %v424_v59 = vmul.f32 0.5, %v423_v57 }
 0x151   :  { %v449_v60 = vmul.f32 %v685_v34, %v437_v58 }
 0x152   :  { %v425_v3 = vsub.f32 1.5, %v424_v59 }
 0x153   :  { %v461_v62 = vadd.f32 %v690_v38, %v449_v60 }
 0x154   :  { %v426_v63 = vmul.f32 %v529_v52, %v425_v3 }
 0x155   :  { %469 = vst.msk [vmem:[%s752_s5 + $0x30] sm:$0xff] %vm30_vm0, %v461_v62 }
 0x156   :  { %v430_v0 = vsel %vm429_vm12, %v529_v52, %v426_v63 }
 0x157   :  { %v438_v2 = vmul.f32 %v430_v0, %v285_v13 }
 0x159   :  { %v450_v4 = vmul.f32 %v685_v34, %v438_v2 }
 0x15b   :  { %v462_v6 = vadd.f32 %v690_v38, %v450_v4 }
 0x15d   :  { %470 = vst.msk [vmem:[%s752_s5 + $0x38] sm:$0xff] %vm30_vm0, %v462_v6 }

// kernel: encoder_block_forward.25
= control target key start
LH: loop header
LB: loop body
LE: loop exit
PB: predicated region body
PF: predicated region fallthrough
CT: control target
= control target key end

     0   :  { %vm27_vm0 = vcmask 523264   ;;  %vm67_vm1 = vcmask 261120   ;;  %s155_s2 = inlined_call_operand.vmem [shape: f32[64,32], index: 2, kind: input, shape index: {}]   ;;  %s156_s3 = inlined_call_operand.vmem [shape: f32[1,32], index: 3, kind: input, shape index: {}]   ;;  %s157_s0 = inlined_call_operand.vmem [shape: f32[16,64], index: 0, kind: input, shape index: {}]   ;;  %s158_s1 = inlined_call_operand.vmem [shape: f32[16,32], index: 1, kind: input, shape index: {}, may-alias: {1,4}]   ;;  %s159_s4 = inlined_call_operand.vmem [shape: f32[16,32], index: 4, kind: output, shape index: {}, may-alias: {1,4}]  }
   0x1   :  { %v26_v0 = vld [vmem:[%s155_s2 + $0x38] sm:$0xff]  ;;  %v25_v1 = vld [vmem:[%s155_s2 + $0x30] sm:$0xff]  ;;  %v24_v2 = vld [vmem:[%s155_s2 + $0x28] sm:$0xff] }
   0x2   :  { %42 = vmatpush.msra.mxu0 %v26_v0  ;;  %76 = vmatpush.msra.mxu1 %v26_v0  ;;  %v23_v3 = vld [vmem:[%s155_s2 + $0x20] sm:$0xff]  ;;  %v22_v4 = vld [vmem:[%s155_s2 + $0x18] sm:$0xff]  ;;  %v21_v5 = vld [vmem:[%s155_s2 + $0x10] sm:$0xff] }
   0x3   :  { %v20_v6 = vld [vmem:[%s155_s2 + $0x8] sm:$0xff]  ;;  %v19_v7 = vld [vmem:[%s155_s2] sm:$0xff] }
   0x4   :  { %43 = vmatpush.msra.mxu0 %v25_v1  ;;  %77 = vmatpush.msra.mxu1 %v25_v1  ;;  %v17_v8 = vld [vmem:[%s157_s0] sm:$0xff]  ;;  %v18_v9 = vld [vmem:[%s157_s0 + $0x8] sm:$0xff] }
   0x5   :  { %v57_v10 = vld [vmem:[%s158_s1] sm:$0xff]  ;;  %v58_v11 = vld [vmem:[%s158_s1 + $0x8] sm:$0xff] }
   0x6   :  { %44 = vmatpush.msra.mxu0 %v24_v2  ;;  %78 = vmatpush.msra.mxu1 %v24_v2  ;;  %v84_v12 = vld [vmem:[%s156_s3] ss:$0 sm:$0xff] }
   0x8   :  { %45 = vmatpush.msra.mxu0 %v23_v3  ;;  %79 = vmatpush.msra.mxu1 %v23_v3 }
   0xa   :  { %46 = vmatpush.msra.mxu0 %v22_v4  ;;  %80 = vmatpush.msra.mxu1 %v22_v4 }
   0xc   :  { %47 = vmatpush.msra.mxu0 %v21_v5  ;;  %81 = vmatpush.msra.mxu1 %v21_v5 }
   0xe   :  { %48 = vmatpush.msra.mxu0 %v20_v6  ;;  %82 = vmatpush.msra.mxu1 %v20_v6 }
  0x10   :  { %49 = vmatpush.msra.mxu0 %v19_v7  ;;  %83 = vmatpush.msra.mxu1 %v19_v7 }
  0x11   :  { %74 = vmatmul.msk.f32.vlgmr.msra.gmra.mxu0 %vm27_vm0, %v17_v8  ;;  %75 = vmatmul.msk.f32.vlgmr.msra.gmra.mxu1 %vm27_vm0, %v18_v9 }
  0x8e   :  { %v51_v13 = vpop.f32.mrf.mxu0  ;;  %v54_v14 = vpop.f32.mrf.mxu1 }
  0x8f   :  { %v59_v15 = vadd.f32 %v57_v10, %v51_v13  ;;  %v60_v16 = vadd.f32 %v58_v11, %v54_v14 }
  0x91   :  { %v65_v17 = vadd.f32 %v84_v12, %v59_v15  ;;  %v66_v18 = vadd.f32 %v84_v12, %v60_v16 }
  0x93   :  { %68 = vst.msk [vmem:[%s159_s4] sm:$0xff] %vm67_vm1, %v65_v17 }
  0x94   :  { %69 = vst.msk [vmem:[%s159_s4 + $0x8] sm:$0xff] %vm67_vm1, %v66_v18 }

</bundles_post_ra>
